<compile_context>
chip_gen: v5e
topology: v5e:2x2
jax: 0.10.0
libtpu: 0.0.40
codegen_flags: <defaults>
</compile_context>

<pallas_src>
import math
from functools import partial

import jax
import jax.numpy as jnp
from jax import lax
from jax.experimental import pallas as pl
from jax.experimental.pallas import tpu as pltpu


# ----------------------------------------------------------------------------- helpers
def _erf(x):
    # Abramowitz & Stegun 7.1.26 polynomial approximation of erf, |err| < 1.5e-7.
    # Matches the "exact" (erf-based) nn.GELU() well below f32 matmul noise.
    p = 0.3275911
    a1, a2, a3, a4, a5 = 0.254829592, -0.284496736, 1.421413741, -1.453152027, 1.061405429
    sgn = jnp.where(x >= 0.0, 1.0, -1.0)
    ax = jnp.abs(x)
    t = 1.0 / (1.0 + p * ax)
    poly = ((((a5 * t + a4) * t + a3) * t + a2) * t + a1) * t
    return sgn * (1.0 - poly * jnp.exp(-ax * ax))


def _layernorm(x, g, b, eps=1e-5):
    # x: (N, E), g/b: (1, E)
    mu = jnp.mean(x, axis=-1, keepdims=True)
    var = jnp.mean(jnp.square(x - mu), axis=-1, keepdims=True)
    return (x - mu) * lax.rsqrt(var + eps) * g + b


# ----------------------------------------------------------------------------- kernel
def transformer_block_kernel(
    x_ref,
    ln1g_ref, ln1b_ref,
    wqkv_ref, bqkv_ref,
    wo_ref, bo_ref,
    ln2g_ref, ln2b_ref,
    w1_ref, b1_ref, w2_ref, b2_ref,
    o_ref,
    *, num_heads,
):
    xb = x_ref[...].astype(jnp.float32)          # (Bblk, T, E)
    Bblk, T, E = xb.shape
    hd = E // num_heads
    x2 = xb.reshape(Bblk * T, E)                 # rows flattened -> big MXU M dim

    # ---------------- self-attention branch (pre-LN) ----------------
    nx = _layernorm(x2, ln1g_ref[...], ln1b_ref[...])
    # Fused Q/K/V projection: one MXU push with N = 3E instead of three.
    # TODO(synk): for non-toy E, cast nx / weights to bf16 here (keep f32 accumulate).
    qkv = jnp.dot(nx, wqkv_ref[...], preferred_element_type=jnp.float32) + bqkv_ref[...]
    qkv3 = qkv.reshape(Bblk, T, 3 * E)           # (Bblk, T, [q|k|v])

    # Causal additive mask + scale, hoisted out of the head loop.
    rows = lax.broadcasted_iota(jnp.int32, (T, T), 0)
    cols = lax.broadcasted_iota(jnp.int32, (T, T), 1)
    mask_add = jnp.where(rows >= cols, 0.0, -1e30).astype(jnp.float32)
    scale = 1.0 / math.sqrt(hd)

    # Per-head loop is a tiny static unroll; each iteration is batched over Bblk and
    # accumulates ctx_h @ Wo[h] directly -> no jnp.concatenate, no lane-concat relayout.
    attn_acc = jnp.zeros((Bblk * T, E), jnp.float32)
    for h in range(num_heads):
        lo = h * hd
        qh = qkv3[:, :, lo:lo + hd] * scale                    # (Bblk, T, hd)
        kh = qkv3[:, :, E + lo:E + lo + hd]                    # (Bblk, T, hd)
        vh = qkv3[:, :, 2 * E + lo:2 * E + lo + hd]            # (Bblk, T, hd)
        s = jnp.einsum("bqd,bkd->bqk", qh, kh,
                       preferred_element_type=jnp.float32) + mask_add
        s = s - jnp.max(s, axis=-1, keepdims=True)
        e = jnp.exp(s)
        p_attn = e * pl.reciprocal(jnp.sum(e, axis=-1, keepdims=True), approx=True)
        ctx = jnp.einsum("bqk,bkd->bqd", p_attn, vh,
                         preferred_element_type=jnp.float32)   # (Bblk, T, hd)
        attn_acc = attn_acc + jnp.dot(ctx.reshape(Bblk * T, hd), wo_ref[h],
                                      preferred_element_type=jnp.float32)

    # TODO(synk): nn.Dropout layers are eval-mode identities here (no RNG dropout).
    x1 = x2 + attn_acc + bo_ref[...]

    # ---------------- MLP branch (pre-LN) ----------------
    nx2 = _layernorm(x1, ln2g_ref[...], ln2b_ref[...])
    h1 = jnp.dot(nx2, w1_ref[...], preferred_element_type=jnp.float32) + b1_ref[...]
    g1 = 0.5 * h1 * (1.0 + _erf(h1 * (1.0 / math.sqrt(2.0))))  # exact (erf) GELU
    h2 = jnp.dot(g1, w2_ref[...], preferred_element_type=jnp.float32) + b2_ref[...]

    o_ref[...] = (x1 + h2).reshape(Bblk, T, E).astype(o_ref.dtype)


# ----------------------------------------------------------------------------- wrapper
def prepare_block_params(params, num_heads):
    """One-time re-layout of PyTorch weights into kernel layout (in, out).

    Do this ONCE, outside the per-call path, so the forward call does not pay an extra
    XLA transpose/copy pass over every weight before the kernel runs.
    """
    E = params["out_proj_w"].shape[0]
    hd = E // num_heads
    wqkv = jnp.asarray(params["in_proj_w"]).T                   # (E, 3E), cols [q|k|v]
    bqkv = jnp.asarray(params["in_proj_b"]).reshape(1, 3 * E)
    wo_h = jnp.asarray(params["out_proj_w"]).T.reshape(num_heads, hd, E)  # rows per head
    bo = jnp.asarray(params["out_proj_b"]).reshape(1, E)
    ln1g = jnp.asarray(params["ln1_g"]).reshape(1, E)
    ln1b = jnp.asarray(params["ln1_b"]).reshape(1, E)
    ln2g = jnp.asarray(params["ln2_g"]).reshape(1, E)
    ln2b = jnp.asarray(params["ln2_b"]).reshape(1, E)
    w1 = jnp.asarray(params["l1_w"]).T                          # (E, 4E)
    b1 = jnp.asarray(params["l1_b"]).reshape(1, 4 * E)
    w2 = jnp.asarray(params["l2_w"]).T                          # (4E, E)
    b2 = jnp.asarray(params["l2_b"]).reshape(1, E)
    return (ln1g, ln1b, wqkv, bqkv, wo_h, bo, ln2g, ln2b, w1, b1, w2, b2)


def _pick_block_b(B, T):
    """Batch elements per grid step: amortize ~0.35us/step and fill MXU rows, while
    keeping >=2 'parallel' grid steps (v7x has 2 TensorCores) when already row-filled."""
    divisors = [d for d in range(1, B + 1) if B % d == 0]
    good = [d for d in divisors if d * T <= 512]
    bb = max(good) if good else 1
    if B // bb < 2:
        alt = [d for d in divisors if B // d >= 2 and d * T >= 128]
        if alt:
            bb = max(alt)
    return bb


def _vmem_estimate_bytes(block_b, T, E, itemsize):
    act = block_b * T * E * itemsize                                 # one activation block
    w = (E * 3 * E + 3 * E + E * E + E                               # wqkv/bqkv, wo/bo
         + E * 4 * E + 4 * E + 4 * E * E + E + 4 * E) * itemsize     # w1/b1, w2/b2, LN
    # in+out activation blocks and full-array weight blocks are double-buffered by the
    # pipeline.  (For large E: single-buffer the constant-index weight specs with
    # pipeline_mode=pl.Buffered(1) and/or keep weights in bf16.)
    return 2 * (2 * act) + 2 * w


def transformer_block(x, prep, num_heads, block_b=None):
    B, T, E = x.shape
    if block_b is None:
        block_b = _pick_block_b(B, T)
    assert B % block_b == 0

    def _rep(arr):  # full-array block, same for every grid step
        nd = arr.ndim

        def imap(b):
            return (0,) * nd

        return pl.BlockSpec(arr.shape, imap)

    in_specs = [pl.BlockSpec((block_b, T, E), lambda b: (b, 0, 0))] + [_rep(a) for a in prep]

    est = _vmem_estimate_bytes(block_b, T, E, x.dtype.itemsize)
    vmem_limit = None
    if est > 12 * (1 << 20):
        # Raise the scoped VMEM limit only when needed; cap with headroom for v7x (64 MiB/TC).
        vmem_limit = int(min(est * 1.5, 56 * (1 << 20)))

    kernel = partial(transformer_block_kernel, num_heads=num_heads)
    return pl.pallas_call(
        kernel,
        out_shape=jax.ShapeDtypeStruct((B, T, E), x.dtype),
        grid_spec=pltpu.PrefetchScalarGridSpec(
            num_scalar_prefetch=0,
            grid=(B // block_b,),
            in_specs=in_specs,
            out_specs=pl.BlockSpec((block_b, T, E), lambda b: (b, 0, 0)),
        ),
        compiler_params=pltpu.CompilerParams(
            dimension_semantics=("parallel",),
            vmem_limit_bytes=vmem_limit,
        ),
    )(x, *prep)


# ----------------------------------------------------------------------------- reference (pure JAX)
def reference(x, params, num_heads):
    B, T, E = x.shape
    hd = E // num_heads

    def ln(t, g, b, eps=1e-5):
        mu = jnp.mean(t, axis=-1, keepdims=True)
        var = jnp.mean(jnp.square(t - mu), axis=-1, keepdims=True)
        return (t - mu) / jnp.sqrt(var + eps) * g + b

    nx = ln(x, params["ln1_g"], params["ln1_b"])
    qkv = nx @ params["in_proj_w"].T + params["in_proj_b"]
    q, k, v = jnp.split(qkv, 3, axis=-1)

    def split_heads(t):
        return t.reshape(B, T, num_heads, hd).transpose(0, 2, 1, 3)

    qh, kh, vh = map(split_heads, (q, k, v))
    s = jnp.einsum("bhqd,bhkd->bhqk", qh, kh) / math.sqrt(hd)
    mask = jnp.tril(jnp.ones((T, T), bool))
    s = jnp.where(mask, s, -jnp.inf)
    pw = jax.nn.softmax(s, axis=-1)
    o = jnp.einsum("bhqk,bhkd->bhqd", pw, vh)
    o = o.transpose(0, 2, 1, 3).reshape(B, T, E)
    o = o @ params["out_proj_w"].T + params["out_proj_b"]
    x1 = x + o

    nx2 = ln(x1, params["ln2_g"], params["ln2_b"])
    h1 = nx2 @ params["l1_w"].T + params["l1_b"]
    g1 = 0.5 * h1 * (1.0 + lax.erf(h1 / math.sqrt(2.0)))
    h2 = g1 @ params["l2_w"].T + params["l2_b"]
    return x1 + h2


def init_params(key, E):
    ks = jax.random.split(key, 10)
    n = lambda k, shape, s: jax.random.normal(k, shape, jnp.float32) * s
    return dict(
        ln1_g=1.0 + n(ks[0], (E,), 0.1), ln1_b=n(ks[1], (E,), 0.1),
        ln2_g=1.0 + n(ks[2], (E,), 0.1), ln2_b=n(ks[3], (E,), 0.1),
        in_proj_w=n(ks[4], (3 * E, E), 0.1), in_proj_b=n(ks[5], (3 * E,), 0.05),
        out_proj_w=n(ks[6], (E, E), 0.1), out_proj_b=n(ks[7], (E,), 0.05),
        l1_w=n(ks[8], (4 * E, E), 0.1), l1_b=jnp.zeros((4 * E,), jnp.float32),
        l2_w=n(ks[9], (E, 4 * E), 0.1), l2_b=jnp.zeros((E,), jnp.float32),
    )


if __name__ == "__main__":
    # embedding_dim=32, num_heads=4; activations (B=2, T=16, E=32), T <= seq_len*3 buffer.
    B, T, E, H = 2, 16, 32, 4
    key = jax.random.PRNGKey(0)
    kx, kp = jax.random.split(key)
    x = jax.random.normal(kx, (B, T, E), jnp.float32)
    params = init_params(kp, E)

    prep = prepare_block_params(params, H)   # one-time weight re-layout (not per-call)

    out = transformer_block(x, prep, H)
    out = jax.block_until_ready(out)

    with jax.default_matmul_precision("float32"):
        ref = jax.block_until_ready(reference(x, params, H))

    assert out.shape == (B, T, E)
    if not jnp.allclose(out, ref, atol=2e-3, rtol=2e-3):
        raise AssertionError(f"mismatch, max err {jnp.max(jnp.abs(out - ref))}")
    print("KERNEL_OK")
</pallas_src>

<mosaic_0001>
module attributes {stable_mosaic.version = 11 : i64} {
  func.func @transformer_block_kernel(%arg0: i32, %arg1: memref<2x16x32xf32, #tpu.memory_space<vmem>>, %arg2: memref<1x32xf32, #tpu.memory_space<vmem>>, %arg3: memref<1x32xf32, #tpu.memory_space<vmem>>, %arg4: memref<32x96xf32, #tpu.memory_space<vmem>>, %arg5: memref<1x96xf32, #tpu.memory_space<vmem>>, %arg6: memref<4x8x32xf32, #tpu.memory_space<vmem>>, %arg7: memref<1x32xf32, #tpu.memory_space<vmem>>, %arg8: memref<1x32xf32, #tpu.memory_space<vmem>>, %arg9: memref<1x32xf32, #tpu.memory_space<vmem>>, %arg10: memref<32x128xf32, #tpu.memory_space<vmem>>, %arg11: memref<1x128xf32, #tpu.memory_space<vmem>>, %arg12: memref<128x32xf32, #tpu.memory_space<vmem>>, %arg13: memref<1x32xf32, #tpu.memory_space<vmem>>, %arg14: memref<2x16x32xf32, #tpu.memory_space<vmem>>) attributes {dimension_semantics = [#tpu.dimension_semantics<parallel>], iteration_bounds = array<i64: 1>, scalar_prefetch = 0 : i64, scratch_operands = 0 : i64, tpu.core_type = #tpu.core_type<tc>, window_params = [{transform_indices = @transform_0, window_bounds = array<i64: 2, 16, 32>}, {pipeline_mode = #tpu.pipeline_mode<synchronous>, transform_indices = @transform_1, window_bounds = array<i64: 1, 32>}, {pipeline_mode = #tpu.pipeline_mode<synchronous>, transform_indices = @transform_2, window_bounds = array<i64: 1, 32>}, {pipeline_mode = #tpu.pipeline_mode<synchronous>, transform_indices = @transform_3, window_bounds = array<i64: 32, 96>}, {pipeline_mode = #tpu.pipeline_mode<synchronous>, transform_indices = @transform_4, window_bounds = array<i64: 1, 96>}, {pipeline_mode = #tpu.pipeline_mode<synchronous>, transform_indices = @transform_5, window_bounds = array<i64: 4, 8, 32>}, {pipeline_mode = #tpu.pipeline_mode<synchronous>, transform_indices = @transform_6, window_bounds = array<i64: 1, 32>}, {pipeline_mode = #tpu.pipeline_mode<synchronous>, transform_indices = @transform_7, window_bounds = array<i64: 1, 32>}, {pipeline_mode = #tpu.pipeline_mode<synchronous>, transform_indices = @transform_8, window_bounds = array<i64: 1, 32>}, {pipeline_mode = #tpu.pipeline_mode<synchronous>, transform_indices = @transform_9, window_bounds = array<i64: 32, 128>}, {pipeline_mode = #tpu.pipeline_mode<synchronous>, transform_indices = @transform_10, window_bounds = array<i64: 1, 128>}, {pipeline_mode = #tpu.pipeline_mode<synchronous>, transform_indices = @transform_11, window_bounds = array<i64: 128, 32>}, {pipeline_mode = #tpu.pipeline_mode<synchronous>, transform_indices = @transform_12, window_bounds = array<i64: 1, 32>}, {transform_indices = @transform_13, window_bounds = array<i64: 2, 16, 32>}]} {
    %c0 = arith.constant 0 : index
    %c0_0 = arith.constant 0 : index
    %c0_1 = arith.constant 0 : index
    %0 = vector.load %arg1[%c0, %c0_0, %c0_1] : memref<2x16x32xf32, #tpu.memory_space<vmem>>, vector<2x16x32xf32>
    %1 = vector.shape_cast %0 : vector<2x16x32xf32> to vector<32x32xf32>
    %c0_2 = arith.constant 0 : index
    %c0_3 = arith.constant 0 : index
    %2 = vector.load %arg2[%c0_2, %c0_3] : memref<1x32xf32, #tpu.memory_space<vmem>>, vector<1x32xf32>
    %c0_4 = arith.constant 0 : index
    %c0_5 = arith.constant 0 : index
    %3 = vector.load %arg3[%c0_4, %c0_5] : memref<1x32xf32, #tpu.memory_space<vmem>>, vector<1x32xf32>
    %cst = arith.constant dense<0.000000e+00> : vector<32xf32>
    %4 = vector.multi_reduction <add>, %1, %cst [1] : vector<32x32xf32> to vector<32xf32>
    %5 = vector.shape_cast %4 : vector<32xf32> to vector<32x1xf32>
    %cst_6 = arith.constant 3.200000e+01 : f32
    %6 = vector.broadcast %cst_6 : f32 to vector<32x1xf32>
    %7 = arith.divf %5, %6 : vector<32x1xf32>
    %8 = vector.broadcast %7 : vector<32x1xf32> to vector<32x32xf32>
    %9 = arith.subf %1, %8 : vector<32x32xf32>
    %10 = arith.mulf %9, %9 : vector<32x32xf32>
    %cst_7 = arith.constant dense<0.000000e+00> : vector<32xf32>
    %11 = vector.multi_reduction <add>, %10, %cst_7 [1] : vector<32x32xf32> to vector<32xf32>
    %12 = vector.shape_cast %11 : vector<32xf32> to vector<32x1xf32>
    %cst_8 = arith.constant 3.200000e+01 : f32
    %13 = vector.broadcast %cst_8 : f32 to vector<32x1xf32>
    %14 = arith.divf %12, %13 : vector<32x1xf32>
    %15 = vector.broadcast %7 : vector<32x1xf32> to vector<32x32xf32>
    %16 = arith.subf %1, %15 : vector<32x32xf32>
    %cst_9 = arith.constant 9.99999974E-6 : f32
    %17 = vector.broadcast %cst_9 : f32 to vector<32x1xf32>
    %18 = arith.addf %14, %17 : vector<32x1xf32>
    %19 = math.rsqrt %18 : vector<32x1xf32>
    %20 = vector.broadcast %19 : vector<32x1xf32> to vector<32x32xf32>
    %21 = arith.mulf %16, %20 : vector<32x32xf32>
    %22 = vector.broadcast %2 : vector<1x32xf32> to vector<32x32xf32>
    %23 = arith.mulf %21, %22 : vector<32x32xf32>
    %24 = vector.broadcast %3 : vector<1x32xf32> to vector<32x32xf32>
    %25 = arith.addf %23, %24 : vector<32x32xf32>
    %c0_10 = arith.constant 0 : index
    %c0_11 = arith.constant 0 : index
    %26 = vector.load %arg4[%c0_10, %c0_11] : memref<32x96xf32, #tpu.memory_space<vmem>>, vector<32x96xf32>
    %cst_12 = arith.constant dense<0.000000e+00> : vector<32x96xf32>
    %27 = tpu.matmul %25, %26, %cst_12 {dimension_numbers = #tpu.dot_dimension_numbers<[1], [0], [0], [1], [0, 0, 1, 1], [], []>} : vector<32x32xf32>, vector<32x96xf32>, vector<32x96xf32> -> vector<32x96xf32>
    %c0_13 = arith.constant 0 : index
    %c0_14 = arith.constant 0 : index
    %28 = vector.load %arg5[%c0_13, %c0_14] : memref<1x96xf32, #tpu.memory_space<vmem>>, vector<1x96xf32>
    %29 = vector.broadcast %28 : vector<1x96xf32> to vector<32x96xf32>
    %30 = arith.addf %27, %29 : vector<32x96xf32>
    %31 = vector.shape_cast %30 : vector<32x96xf32> to vector<2x16x96xf32>
    %32 = tpu.iota {dimensions = array<i32: 0>} : vector<16x16xi32>
    %33 = tpu.iota {dimensions = array<i32: 1>} : vector<16x16xi32>
    %34 = arith.cmpi sge, %32, %33 : vector<16x16xi32>
    %cst_15 = arith.constant 0.000000e+00 : f32
    %cst_16 = arith.constant -1.000000e+30 : f32
    %35 = vector.broadcast %cst_15 : f32 to vector<16x16xf32>
    %36 = vector.broadcast %cst_16 : f32 to vector<16x16xf32>
    %37 = arith.select %34, %35, %36 : vector<16x16xi1>, vector<16x16xf32>
    %cst_17 = arith.constant 0.000000e+00 : f32
    %38 = vector.broadcast %cst_17 : f32 to vector<32x32xf32>
    %39 = vector.extract_strided_slice %31 {offsets = [0, 0, 0], sizes = [2, 16, 8], strides = [1, 1, 1]} : vector<2x16x96xf32> to vector<2x16x8xf32>
    %cst_18 = arith.constant 0.353553385 : f32
    %40 = vector.broadcast %cst_18 : f32 to vector<2x16x8xf32>
    %41 = arith.mulf %39, %40 : vector<2x16x8xf32>
    %42 = vector.extract_strided_slice %31 {offsets = [0, 0, 32], sizes = [2, 16, 8], strides = [1, 1, 1]} : vector<2x16x96xf32> to vector<2x16x8xf32>
    %43 = vector.extract_strided_slice %31 {offsets = [0, 0, 64], sizes = [2, 16, 8], strides = [1, 1, 1]} : vector<2x16x96xf32> to vector<2x16x8xf32>
    "tpu.trace_start"() <{level = 10 : i32, message = "bqd,bkd->bqk"}> : () -> ()
    %cst_19 = arith.constant dense<0.000000e+00> : vector<2x16x16xf32>
    %44 = tpu.matmul %41, %42, %cst_19 {dimension_numbers = #tpu.dot_dimension_numbers<[2], [2], [1], [1], [0, 0, 0, 1, 1, 1], [0], [0]>} : vector<2x16x8xf32>, vector<2x16x8xf32>, vector<2x16x16xf32> -> vector<2x16x16xf32>
    "tpu.trace_stop"() : () -> ()
    %45 = vector.shape_cast %37 : vector<16x16xf32> to vector<1x16x16xf32>
    %46 = vector.broadcast %45 : vector<1x16x16xf32> to vector<2x16x16xf32>
    %47 = arith.addf %44, %46 : vector<2x16x16xf32>
    %cst_20 = arith.constant dense<0xFF800000> : vector<2x16xf32>
    %48 = vector.multi_reduction <maximumf>, %47, %cst_20 [2] : vector<2x16x16xf32> to vector<2x16xf32>
    %49 = vector.shape_cast %48 : vector<2x16xf32> to vector<2x16x1xf32>
    %50 = vector.broadcast %49 : vector<2x16x1xf32> to vector<2x16x16xf32>
    %51 = arith.subf %47, %50 : vector<2x16x16xf32>
    %52 = math.exp %51 : vector<2x16x16xf32>
    %cst_21 = arith.constant dense<0.000000e+00> : vector<2x16xf32>
    %53 = vector.multi_reduction <add>, %52, %cst_21 [2] : vector<2x16x16xf32> to vector<2x16xf32>
    %54 = vector.shape_cast %53 : vector<2x16xf32> to vector<2x16x1xf32>
    %55 = tpu.reciprocal %54 {approx = true} : vector<2x16x1xf32> -> vector<2x16x1xf32>
    %56 = vector.broadcast %55 : vector<2x16x1xf32> to vector<2x16x16xf32>
    %57 = arith.mulf %52, %56 : vector<2x16x16xf32>
    "tpu.trace_start"() <{level = 10 : i32, message = "bqk,bkd->bqd"}> : () -> ()
    %cst_22 = arith.constant dense<0.000000e+00> : vector<2x16x8xf32>
    %58 = tpu.matmul %57, %43, %cst_22 {dimension_numbers = #tpu.dot_dimension_numbers<[2], [1], [1], [2], [0, 0, 0, 1, 1, 2], [0], [0]>} : vector<2x16x16xf32>, vector<2x16x8xf32>, vector<2x16x8xf32> -> vector<2x16x8xf32>
    "tpu.trace_stop"() : () -> ()
    %59 = vector.shape_cast %58 : vector<2x16x8xf32> to vector<32x8xf32>
    %c0_23 = arith.constant 0 : index
    %c0_24 = arith.constant 0 : index
    %c0_25 = arith.constant 0 : index
    %60 = vector.load %arg6[%c0_23, %c0_24, %c0_25] : memref<4x8x32xf32, #tpu.memory_space<vmem>>, vector<1x8x32xf32>
    %61 = vector.shape_cast %60 : vector<1x8x32xf32> to vector<8x32xf32>
    %cst_26 = arith.constant dense<0.000000e+00> : vector<32x32xf32>
    %62 = tpu.matmul %59, %61, %cst_26 {dimension_numbers = #tpu.dot_dimension_numbers<[1], [0], [0], [1], [0, 0, 1, 1], [], []>} : vector<32x8xf32>, vector<8x32xf32>, vector<32x32xf32> -> vector<32x32xf32>
    %63 = arith.addf %38, %62 : vector<32x32xf32>
    %64 = vector.extract_strided_slice %31 {offsets = [0, 0, 8], sizes = [2, 16, 8], strides = [1, 1, 1]} : vector<2x16x96xf32> to vector<2x16x8xf32>
    %cst_27 = arith.constant 0.353553385 : f32
    %65 = vector.broadcast %cst_27 : f32 to vector<2x16x8xf32>
    %66 = arith.mulf %64, %65 : vector<2x16x8xf32>
    %67 = vector.extract_strided_slice %31 {offsets = [0, 0, 40], sizes = [2, 16, 8], strides = [1, 1, 1]} : vector<2x16x96xf32> to vector<2x16x8xf32>
    %68 = vector.extract_strided_slice %31 {offsets = [0, 0, 72], sizes = [2, 16, 8], strides = [1, 1, 1]} : vector<2x16x96xf32> to vector<2x16x8xf32>
    "tpu.trace_start"() <{level = 10 : i32, message = "bqd,bkd->bqk"}> : () -> ()
    %cst_28 = arith.constant dense<0.000000e+00> : vector<2x16x16xf32>
    %69 = tpu.matmul %66, %67, %cst_28 {dimension_numbers = #tpu.dot_dimension_numbers<[2], [2], [1], [1], [0, 0, 0, 1, 1, 1], [0], [0]>} : vector<2x16x8xf32>, vector<2x16x8xf32>, vector<2x16x16xf32> -> vector<2x16x16xf32>
    "tpu.trace_stop"() : () -> ()
    %70 = vector.shape_cast %37 : vector<16x16xf32> to vector<1x16x16xf32>
    %71 = vector.broadcast %70 : vector<1x16x16xf32> to vector<2x16x16xf32>
    %72 = arith.addf %69, %71 : vector<2x16x16xf32>
    %cst_29 = arith.constant dense<0xFF800000> : vector<2x16xf32>
    %73 = vector.multi_reduction <maximumf>, %72, %cst_29 [2] : vector<2x16x16xf32> to vector<2x16xf32>
    %74 = vector.shape_cast %73 : vector<2x16xf32> to vector<2x16x1xf32>
    %75 = vector.broadcast %74 : vector<2x16x1xf32> to vector<2x16x16xf32>
    %76 = arith.subf %72, %75 : vector<2x16x16xf32>
    %77 = math.exp %76 : vector<2x16x16xf32>
    %cst_30 = arith.constant dense<0.000000e+00> : vector<2x16xf32>
    %78 = vector.multi_reduction <add>, %77, %cst_30 [2] : vector<2x16x16xf32> to vector<2x16xf32>
    %79 = vector.shape_cast %78 : vector<2x16xf32> to vector<2x16x1xf32>
    %80 = tpu.reciprocal %79 {approx = true} : vector<2x16x1xf32> -> vector<2x16x1xf32>
    %81 = vector.broadcast %80 : vector<2x16x1xf32> to vector<2x16x16xf32>
    %82 = arith.mulf %77, %81 : vector<2x16x16xf32>
    "tpu.trace_start"() <{level = 10 : i32, message = "bqk,bkd->bqd"}> : () -> ()
    %cst_31 = arith.constant dense<0.000000e+00> : vector<2x16x8xf32>
    %83 = tpu.matmul %82, %68, %cst_31 {dimension_numbers = #tpu.dot_dimension_numbers<[2], [1], [1], [2], [0, 0, 0, 1, 1, 2], [0], [0]>} : vector<2x16x16xf32>, vector<2x16x8xf32>, vector<2x16x8xf32> -> vector<2x16x8xf32>
    "tpu.trace_stop"() : () -> ()
    %84 = vector.shape_cast %83 : vector<2x16x8xf32> to vector<32x8xf32>
    %c1 = arith.constant 1 : index
    %c0_32 = arith.constant 0 : index
    %c0_33 = arith.constant 0 : index
    %85 = vector.load %arg6[%c1, %c0_32, %c0_33] : memref<4x8x32xf32, #tpu.memory_space<vmem>>, vector<1x8x32xf32>
    %86 = vector.shape_cast %85 : vector<1x8x32xf32> to vector<8x32xf32>
    %cst_34 = arith.constant dense<0.000000e+00> : vector<32x32xf32>
    %87 = tpu.matmul %84, %86, %cst_34 {dimension_numbers = #tpu.dot_dimension_numbers<[1], [0], [0], [1], [0, 0, 1, 1], [], []>} : vector<32x8xf32>, vector<8x32xf32>, vector<32x32xf32> -> vector<32x32xf32>
    %88 = arith.addf %63, %87 : vector<32x32xf32>
    %89 = vector.extract_strided_slice %31 {offsets = [0, 0, 16], sizes = [2, 16, 8], strides = [1, 1, 1]} : vector<2x16x96xf32> to vector<2x16x8xf32>
    %cst_35 = arith.constant 0.353553385 : f32
    %90 = vector.broadcast %cst_35 : f32 to vector<2x16x8xf32>
    %91 = arith.mulf %89, %90 : vector<2x16x8xf32>
    %92 = vector.extract_strided_slice %31 {offsets = [0, 0, 48], sizes = [2, 16, 8], strides = [1, 1, 1]} : vector<2x16x96xf32> to vector<2x16x8xf32>
    %93 = vector.extract_strided_slice %31 {offsets = [0, 0, 80], sizes = [2, 16, 8], strides = [1, 1, 1]} : vector<2x16x96xf32> to vector<2x16x8xf32>
    "tpu.trace_start"() <{level = 10 : i32, message = "bqd,bkd->bqk"}> : () -> ()
    %cst_36 = arith.constant dense<0.000000e+00> : vector<2x16x16xf32>
    %94 = tpu.matmul %91, %92, %cst_36 {dimension_numbers = #tpu.dot_dimension_numbers<[2], [2], [1], [1], [0, 0, 0, 1, 1, 1], [0], [0]>} : vector<2x16x8xf32>, vector<2x16x8xf32>, vector<2x16x16xf32> -> vector<2x16x16xf32>
    "tpu.trace_stop"() : () -> ()
    %95 = vector.shape_cast %37 : vector<16x16xf32> to vector<1x16x16xf32>
    %96 = vector.broadcast %95 : vector<1x16x16xf32> to vector<2x16x16xf32>
    %97 = arith.addf %94, %96 : vector<2x16x16xf32>
    %cst_37 = arith.constant dense<0xFF800000> : vector<2x16xf32>
    %98 = vector.multi_reduction <maximumf>, %97, %cst_37 [2] : vector<2x16x16xf32> to vector<2x16xf32>
    %99 = vector.shape_cast %98 : vector<2x16xf32> to vector<2x16x1xf32>
    %100 = vector.broadcast %99 : vector<2x16x1xf32> to vector<2x16x16xf32>
    %101 = arith.subf %97, %100 : vector<2x16x16xf32>
    %102 = math.exp %101 : vector<2x16x16xf32>
    %cst_38 = arith.constant dense<0.000000e+00> : vector<2x16xf32>
    %103 = vector.multi_reduction <add>, %102, %cst_38 [2] : vector<2x16x16xf32> to vector<2x16xf32>
    %104 = vector.shape_cast %103 : vector<2x16xf32> to vector<2x16x1xf32>
    %105 = tpu.reciprocal %104 {approx = true} : vector<2x16x1xf32> -> vector<2x16x1xf32>
    %106 = vector.broadcast %105 : vector<2x16x1xf32> to vector<2x16x16xf32>
    %107 = arith.mulf %102, %106 : vector<2x16x16xf32>
    "tpu.trace_start"() <{level = 10 : i32, message = "bqk,bkd->bqd"}> : () -> ()
    %cst_39 = arith.constant dense<0.000000e+00> : vector<2x16x8xf32>
    %108 = tpu.matmul %107, %93, %cst_39 {dimension_numbers = #tpu.dot_dimension_numbers<[2], [1], [1], [2], [0, 0, 0, 1, 1, 2], [0], [0]>} : vector<2x16x16xf32>, vector<2x16x8xf32>, vector<2x16x8xf32> -> vector<2x16x8xf32>
    "tpu.trace_stop"() : () -> ()
    %109 = vector.shape_cast %108 : vector<2x16x8xf32> to vector<32x8xf32>
    %c2 = arith.constant 2 : index
    %c0_40 = arith.constant 0 : index
    %c0_41 = arith.constant 0 : index
    %110 = vector.load %arg6[%c2, %c0_40, %c0_41] : memref<4x8x32xf32, #tpu.memory_space<vmem>>, vector<1x8x32xf32>
    %111 = vector.shape_cast %110 : vector<1x8x32xf32> to vector<8x32xf32>
    %cst_42 = arith.constant dense<0.000000e+00> : vector<32x32xf32>
    %112 = tpu.matmul %109, %111, %cst_42 {dimension_numbers = #tpu.dot_dimension_numbers<[1], [0], [0], [1], [0, 0, 1, 1], [], []>} : vector<32x8xf32>, vector<8x32xf32>, vector<32x32xf32> -> vector<32x32xf32>
    %113 = arith.addf %88, %112 : vector<32x32xf32>
    %114 = vector.extract_strided_slice %31 {offsets = [0, 0, 24], sizes = [2, 16, 8], strides = [1, 1, 1]} : vector<2x16x96xf32> to vector<2x16x8xf32>
    %cst_43 = arith.constant 0.353553385 : f32
    %115 = vector.broadcast %cst_43 : f32 to vector<2x16x8xf32>
    %116 = arith.mulf %114, %115 : vector<2x16x8xf32>
    %117 = vector.extract_strided_slice %31 {offsets = [0, 0, 56], sizes = [2, 16, 8], strides = [1, 1, 1]} : vector<2x16x96xf32> to vector<2x16x8xf32>
    %118 = vector.extract_strided_slice %31 {offsets = [0, 0, 88], sizes = [2, 16, 8], strides = [1, 1, 1]} : vector<2x16x96xf32> to vector<2x16x8xf32>
    "tpu.trace_start"() <{level = 10 : i32, message = "bqd,bkd->bqk"}> : () -> ()
    %cst_44 = arith.constant dense<0.000000e+00> : vector<2x16x16xf32>
    %119 = tpu.matmul %116, %117, %cst_44 {dimension_numbers = #tpu.dot_dimension_numbers<[2], [2], [1], [1], [0, 0, 0, 1, 1, 1], [0], [0]>} : vector<2x16x8xf32>, vector<2x16x8xf32>, vector<2x16x16xf32> -> vector<2x16x16xf32>
    "tpu.trace_stop"() : () -> ()
    %120 = vector.shape_cast %37 : vector<16x16xf32> to vector<1x16x16xf32>
    %121 = vector.broadcast %120 : vector<1x16x16xf32> to vector<2x16x16xf32>
    %122 = arith.addf %119, %121 : vector<2x16x16xf32>
    %cst_45 = arith.constant dense<0xFF800000> : vector<2x16xf32>
    %123 = vector.multi_reduction <maximumf>, %122, %cst_45 [2] : vector<2x16x16xf32> to vector<2x16xf32>
    %124 = vector.shape_cast %123 : vector<2x16xf32> to vector<2x16x1xf32>
    %125 = vector.broadcast %124 : vector<2x16x1xf32> to vector<2x16x16xf32>
    %126 = arith.subf %122, %125 : vector<2x16x16xf32>
    %127 = math.exp %126 : vector<2x16x16xf32>
    %cst_46 = arith.constant dense<0.000000e+00> : vector<2x16xf32>
    %128 = vector.multi_reduction <add>, %127, %cst_46 [2] : vector<2x16x16xf32> to vector<2x16xf32>
    %129 = vector.shape_cast %128 : vector<2x16xf32> to vector<2x16x1xf32>
    %130 = tpu.reciprocal %129 {approx = true} : vector<2x16x1xf32> -> vector<2x16x1xf32>
    %131 = vector.broadcast %130 : vector<2x16x1xf32> to vector<2x16x16xf32>
    %132 = arith.mulf %127, %131 : vector<2x16x16xf32>
    "tpu.trace_start"() <{level = 10 : i32, message = "bqk,bkd->bqd"}> : () -> ()
    %cst_47 = arith.constant dense<0.000000e+00> : vector<2x16x8xf32>
    %133 = tpu.matmul %132, %118, %cst_47 {dimension_numbers = #tpu.dot_dimension_numbers<[2], [1], [1], [2], [0, 0, 0, 1, 1, 2], [0], [0]>} : vector<2x16x16xf32>, vector<2x16x8xf32>, vector<2x16x8xf32> -> vector<2x16x8xf32>
    "tpu.trace_stop"() : () -> ()
    %134 = vector.shape_cast %133 : vector<2x16x8xf32> to vector<32x8xf32>
    %c3 = arith.constant 3 : index
    %c0_48 = arith.constant 0 : index
    %c0_49 = arith.constant 0 : index
    %135 = vector.load %arg6[%c3, %c0_48, %c0_49] : memref<4x8x32xf32, #tpu.memory_space<vmem>>, vector<1x8x32xf32>
    %136 = vector.shape_cast %135 : vector<1x8x32xf32> to vector<8x32xf32>
    %cst_50 = arith.constant dense<0.000000e+00> : vector<32x32xf32>
    %137 = tpu.matmul %134, %136, %cst_50 {dimension_numbers = #tpu.dot_dimension_numbers<[1], [0], [0], [1], [0, 0, 1, 1], [], []>} : vector<32x8xf32>, vector<8x32xf32>, vector<32x32xf32> -> vector<32x32xf32>
    %138 = arith.addf %113, %137 : vector<32x32xf32>
    %139 = arith.addf %1, %138 : vector<32x32xf32>
    %c0_51 = arith.constant 0 : index
    %c0_52 = arith.constant 0 : index
    %140 = vector.load %arg7[%c0_51, %c0_52] : memref<1x32xf32, #tpu.memory_space<vmem>>, vector<1x32xf32>
    %141 = vector.broadcast %140 : vector<1x32xf32> to vector<32x32xf32>
    %142 = arith.addf %139, %141 : vector<32x32xf32>
    %c0_53 = arith.constant 0 : index
    %c0_54 = arith.constant 0 : index
    %143 = vector.load %arg8[%c0_53, %c0_54] : memref<1x32xf32, #tpu.memory_space<vmem>>, vector<1x32xf32>
    %c0_55 = arith.constant 0 : index
    %c0_56 = arith.constant 0 : index
    %144 = vector.load %arg9[%c0_55, %c0_56] : memref<1x32xf32, #tpu.memory_space<vmem>>, vector<1x32xf32>
    %cst_57 = arith.constant dense<0.000000e+00> : vector<32xf32>
    %145 = vector.multi_reduction <add>, %142, %cst_57 [1] : vector<32x32xf32> to vector<32xf32>
    %146 = vector.shape_cast %145 : vector<32xf32> to vector<32x1xf32>
    %cst_58 = arith.constant 3.200000e+01 : f32
    %147 = vector.broadcast %cst_58 : f32 to vector<32x1xf32>
    %148 = arith.divf %146, %147 : vector<32x1xf32>
    %149 = vector.broadcast %148 : vector<32x1xf32> to vector<32x32xf32>
    %150 = arith.subf %142, %149 : vector<32x32xf32>
    %151 = arith.mulf %150, %150 : vector<32x32xf32>
    %cst_59 = arith.constant dense<0.000000e+00> : vector<32xf32>
    %152 = vector.multi_reduction <add>, %151, %cst_59 [1] : vector<32x32xf32> to vector<32xf32>
    %153 = vector.shape_cast %152 : vector<32xf32> to vector<32x1xf32>
    %cst_60 = arith.constant 3.200000e+01 : f32
    %154 = vector.broadcast %cst_60 : f32 to vector<32x1xf32>
    %155 = arith.divf %153, %154 : vector<32x1xf32>
    %156 = vector.broadcast %148 : vector<32x1xf32> to vector<32x32xf32>
    %157 = arith.subf %142, %156 : vector<32x32xf32>
    %cst_61 = arith.constant 9.99999974E-6 : f32
    %158 = vector.broadcast %cst_61 : f32 to vector<32x1xf32>
    %159 = arith.addf %155, %158 : vector<32x1xf32>
    %160 = math.rsqrt %159 : vector<32x1xf32>
    %161 = vector.broadcast %160 : vector<32x1xf32> to vector<32x32xf32>
    %162 = arith.mulf %157, %161 : vector<32x32xf32>
    %163 = vector.broadcast %143 : vector<1x32xf32> to vector<32x32xf32>
    %164 = arith.mulf %162, %163 : vector<32x32xf32>
    %165 = vector.broadcast %144 : vector<1x32xf32> to vector<32x32xf32>
    %166 = arith.addf %164, %165 : vector<32x32xf32>
    %c0_62 = arith.constant 0 : index
    %c0_63 = arith.constant 0 : index
    %167 = vector.load %arg10[%c0_62, %c0_63] : memref<32x128xf32, #tpu.memory_space<vmem>>, vector<32x128xf32>
    %cst_64 = arith.constant dense<0.000000e+00> : vector<32x128xf32>
    %168 = tpu.matmul %166, %167, %cst_64 {dimension_numbers = #tpu.dot_dimension_numbers<[1], [0], [0], [1], [0, 0, 1, 1], [], []>} : vector<32x32xf32>, vector<32x128xf32>, vector<32x128xf32> -> vector<32x128xf32>
    %c0_65 = arith.constant 0 : index
    %c0_66 = arith.constant 0 : index
    %169 = vector.load %arg11[%c0_65, %c0_66] : memref<1x128xf32, #tpu.memory_space<vmem>>, vector<1x128xf32>
    %170 = vector.broadcast %169 : vector<1x128xf32> to vector<32x128xf32>
    %171 = arith.addf %168, %170 : vector<32x128xf32>
    %cst_67 = arith.constant 5.000000e-01 : f32
    %172 = vector.broadcast %cst_67 : f32 to vector<32x128xf32>
    %173 = arith.mulf %172, %171 : vector<32x128xf32>
    %cst_68 = arith.constant 0.707106769 : f32
    %174 = vector.broadcast %cst_68 : f32 to vector<32x128xf32>
    %175 = arith.mulf %171, %174 : vector<32x128xf32>
    %cst_69 = arith.constant 0.000000e+00 : f32
    %176 = vector.broadcast %cst_69 : f32 to vector<32x128xf32>
    %177 = arith.cmpf oge, %175, %176 : vector<32x128xf32>
    %cst_70 = arith.constant 1.000000e+00 : f32
    %cst_71 = arith.constant -1.000000e+00 : f32
    %178 = vector.broadcast %cst_70 : f32 to vector<32x128xf32>
    %179 = vector.broadcast %cst_71 : f32 to vector<32x128xf32>
    %180 = arith.select %177, %178, %179 : vector<32x128xi1>, vector<32x128xf32>
    %181 = math.absf %175 : vector<32x128xf32>
    %cst_72 = arith.constant 0.327591091 : f32
    %182 = vector.broadcast %cst_72 : f32 to vector<32x128xf32>
    %183 = arith.mulf %182, %181 : vector<32x128xf32>
    %cst_73 = arith.constant 1.000000e+00 : f32
    %184 = vector.broadcast %cst_73 : f32 to vector<32x128xf32>
    %185 = arith.addf %184, %183 : vector<32x128xf32>
    %cst_74 = arith.constant 1.000000e+00 : f32
    %186 = vector.broadcast %cst_74 : f32 to vector<32x128xf32>
    %187 = arith.divf %186, %185 : vector<32x128xf32>
    %cst_75 = arith.constant 1.06140542 : f32
    %188 = vector.broadcast %cst_75 : f32 to vector<32x128xf32>
    %189 = arith.mulf %188, %187 : vector<32x128xf32>
    %cst_76 = arith.constant -1.45315206 : f32
    %190 = vector.broadcast %cst_76 : f32 to vector<32x128xf32>
    %191 = arith.addf %189, %190 : vector<32x128xf32>
    %192 = arith.mulf %191, %187 : vector<32x128xf32>
    %cst_77 = arith.constant 1.42141378 : f32
    %193 = vector.broadcast %cst_77 : f32 to vector<32x128xf32>
    %194 = arith.addf %192, %193 : vector<32x128xf32>
    %195 = arith.mulf %194, %187 : vector<32x128xf32>
    %cst_78 = arith.constant -0.284496725 : f32
    %196 = vector.broadcast %cst_78 : f32 to vector<32x128xf32>
    %197 = arith.addf %195, %196 : vector<32x128xf32>
    %198 = arith.mulf %197, %187 : vector<32x128xf32>
    %cst_79 = arith.constant 0.254829586 : f32
    %199 = vector.broadcast %cst_79 : f32 to vector<32x128xf32>
    %200 = arith.addf %198, %199 : vector<32x128xf32>
    %201 = arith.mulf %200, %187 : vector<32x128xf32>
    %cst_80 = arith.constant 0.000000e+00 : f32
    %202 = vector.broadcast %cst_80 : f32 to vector<32x128xf32>
    %203 = arith.subf %202, %181 : vector<32x128xf32>
    %204 = arith.mulf %203, %181 : vector<32x128xf32>
    %205 = math.exp %204 : vector<32x128xf32>
    %206 = arith.mulf %201, %205 : vector<32x128xf32>
    %cst_81 = arith.constant 1.000000e+00 : f32
    %207 = vector.broadcast %cst_81 : f32 to vector<32x128xf32>
    %208 = arith.subf %207, %206 : vector<32x128xf32>
    %209 = arith.mulf %180, %208 : vector<32x128xf32>
    %cst_82 = arith.constant 1.000000e+00 : f32
    %210 = vector.broadcast %cst_82 : f32 to vector<32x128xf32>
    %211 = arith.addf %210, %209 : vector<32x128xf32>
    %212 = arith.mulf %173, %211 : vector<32x128xf32>
    %c0_83 = arith.constant 0 : index
    %c0_84 = arith.constant 0 : index
    %213 = vector.load %arg12[%c0_83, %c0_84] : memref<128x32xf32, #tpu.memory_space<vmem>>, vector<128x32xf32>
    %cst_85 = arith.constant dense<0.000000e+00> : vector<32x32xf32>
    %214 = tpu.matmul %212, %213, %cst_85 {dimension_numbers = #tpu.dot_dimension_numbers<[1], [0], [0], [1], [0, 0, 1, 1], [], []>} : vector<32x128xf32>, vector<128x32xf32>, vector<32x32xf32> -> vector<32x32xf32>
    %c0_86 = arith.constant 0 : index
    %c0_87 = arith.constant 0 : index
    %215 = vector.load %arg13[%c0_86, %c0_87] : memref<1x32xf32, #tpu.memory_space<vmem>>, vector<1x32xf32>
    %216 = vector.broadcast %215 : vector<1x32xf32> to vector<32x32xf32>
    %217 = arith.addf %214, %216 : vector<32x32xf32>
    %218 = arith.addf %142, %217 : vector<32x32xf32>
    %219 = vector.shape_cast %218 : vector<32x32xf32> to vector<2x16x32xf32>
    %c0_88 = arith.constant 0 : index
    %c0_89 = arith.constant 0 : index
    %c0_90 = arith.constant 0 : index
    %220 = vector.load %arg14[%c0_88, %c0_89, %c0_90] : memref<2x16x32xf32, #tpu.memory_space<vmem>>, vector<2x16x32xf32>
    tpu.vector_store %arg14[%c0_88, %c0_89, %c0_90], %219 {strides = array<i32>} : memref<2x16x32xf32, #tpu.memory_space<vmem>>, vector<2x16x32xf32>,
    return
  }
  func.func @transform_0(%arg0: i32) -> (i32, i32, i32) {
    %c0_i32 = arith.constant 0 : i32
    %c0_i32_0 = arith.constant 0 : i32
    %c0_i32_1 = arith.constant 0 : i32
    return %arg0, %c0_i32, %c0_i32_0 : i32, i32, i32
  }
  func.func @transform_1(%arg0: i32) -> (i32, i32) {
    %c0_i32 = arith.constant 0 : i32
    %c0_i32_0 = arith.constant 0 : i32
    %c0_i32_1 = arith.constant 0 : i32
    return %c0_i32, %c0_i32_0 : i32, i32
  }
  func.func @transform_2(%arg0: i32) -> (i32, i32) {
    %c0_i32 = arith.constant 0 : i32
    %c0_i32_0 = arith.constant 0 : i32
    %c0_i32_1 = arith.constant 0 : i32
    return %c0_i32, %c0_i32_0 : i32, i32
  }
  func.func @transform_3(%arg0: i32) -> (i32, i32) {
    %c0_i32 = arith.constant 0 : i32
    %c0_i32_0 = arith.constant 0 : i32
    %c0_i32_1 = arith.constant 0 : i32
    return %c0_i32, %c0_i32_0 : i32, i32
  }
  func.func @transform_4(%arg0: i32) -> (i32, i32) {
    %c0_i32 = arith.constant 0 : i32
    %c0_i32_0 = arith.constant 0 : i32
    %c0_i32_1 = arith.constant 0 : i32
    return %c0_i32, %c0_i32_0 : i32, i32
  }
  func.func @transform_5(%arg0: i32) -> (i32, i32, i32) {
    %c0_i32 = arith.constant 0 : i32
    %c0_i32_0 = arith.constant 0 : i32
    %c0_i32_1 = arith.constant 0 : i32
    %c0_i32_2 = arith.constant 0 : i32
    return %c0_i32, %c0_i32_0, %c0_i32_1 : i32, i32, i32
  }
  func.func @transform_6(%arg0: i32) -> (i32, i32) {
    %c0_i32 = arith.constant 0 : i32
    %c0_i32_0 = arith.constant 0 : i32
    %c0_i32_1 = arith.constant 0 : i32
    return %c0_i32, %c0_i32_0 : i32, i32
  }
  func.func @transform_7(%arg0: i32) -> (i32, i32) {
    %c0_i32 = arith.constant 0 : i32
    %c0_i32_0 = arith.constant 0 : i32
    %c0_i32_1 = arith.constant 0 : i32
    return %c0_i32, %c0_i32_0 : i32, i32
  }
  func.func @transform_8(%arg0: i32) -> (i32, i32) {
    %c0_i32 = arith.constant 0 : i32
    %c0_i32_0 = arith.constant 0 : i32
    %c0_i32_1 = arith.constant 0 : i32
    return %c0_i32, %c0_i32_0 : i32, i32
  }
  func.func @transform_9(%arg0: i32) -> (i32, i32) {
    %c0_i32 = arith.constant 0 : i32
    %c0_i32_0 = arith.constant 0 : i32
    %c0_i32_1 = arith.constant 0 : i32
    return %c0_i32, %c0_i32_0 : i32, i32
  }
  func.func @transform_10(%arg0: i32) -> (i32, i32) {
    %c0_i32 = arith.constant 0 : i32
    %c0_i32_0 = arith.constant 0 : i32
    %c0_i32_1 = arith.constant 0 : i32
    return %c0_i32, %c0_i32_0 : i32, i32
  }
  func.func @transform_11(%arg0: i32) -> (i32, i32) {
    %c0_i32 = arith.constant 0 : i32
    %c0_i32_0 = arith.constant 0 : i32
    %c0_i32_1 = arith.constant 0 : i32
    return %c0_i32, %c0_i32_0 : i32, i32
  }
  func.func @transform_12(%arg0: i32) -> (i32, i32) {
    %c0_i32 = arith.constant 0 : i32
    %c0_i32_0 = arith.constant 0 : i32
    %c0_i32_1 = arith.constant 0 : i32
    return %c0_i32, %c0_i32_0 : i32, i32
  }
  func.func @transform_13(%arg0: i32) -> (i32, i32, i32) {
    %c0_i32 = arith.constant 0 : i32
    %c0_i32_0 = arith.constant 0 : i32
    %c0_i32_1 = arith.constant 0 : i32
    return %arg0, %c0_i32, %c0_i32_0 : i32, i32, i32
  }
}

</mosaic_0001>

<bundles_post_ra>
// kernel: tpu_custom_call.1
= control target key start
LH: loop header
LB: loop body
LE: loop exit
PB: predicated region body
PF: predicated region fallthrough
CT: control target
= control target key end

     0   :  { %vm51_vm0 = vcmask 261120   ;;  %s2455_s0 = inlined_call_operand.vmem [shape: f32[2,16,32], index: 0, kind: input, shape index: {}]   ;;  %s2456_s1 = inlined_call_operand.vmem [shape: f32[1,32], index: 1, kind: input, shape index: {}]   ;;  %s2457_s2 = inlined_call_operand.vmem [shape: f32[1,32], index: 2, kind: input, shape index: {}]   ;;  %s2458_s3 = inlined_call_operand.vmem [shape: f32[32,96], index: 3, kind: input, shape index: {}]   ;;  %s2459_s4 = inlined_call_operand.vmem [shape: f32[1,96], index: 4, kind: input, shape index: {}]   ;;  %s2460_s5 = inlined_call_operand.vmem [shape: f32[4,8,32], index: 5, kind: input, shape index: {}]   ;;  %s2461_s6 = inlined_call_operand.vmem [shape: f32[1,32], index: 6, kind: input, shape index: {}]   ;;  %s2462_s7 = inlined_call_operand.vmem [shape: f32[1,32], index: 7, kind: input, shape index: {}]   ;;  %s2463_s8 = inlined_call_operand.vmem [shape: f32[1,32], index: 8, kind: input, shape index: {}]   ;;  %s2464_s9 = inlined_call_operand.vmem [shape: f32[32,128], index: 9, kind: input, shape index: {}]   ;;  %s2465_s10 = inlined_call_operand.vmem [shape: f32[1,128], index: 10, kind: input, shape index: {}]   ;;  %s2466_s11 = inlined_call_operand.vmem [shape: f32[128,32], index: 11, kind: input, shape index: {}]   ;;  %s2467_s12 = inlined_call_operand.vmem [shape: f32[1,32], index: 12, kind: input, shape index: {}]   ;;  %s2468_s13 = inlined_call_operand.hbm [shape: f32[2,16,32], index: 13, kind: output, shape index: {}]  }
   0x1   :  { %v47_v0 = vld [vmem:[%s2455_s0 + $0x10] sm:$0xff]  ;;  %v45_v1 = vld [vmem:[%s2455_s0] sm:$0xff]  ;;  %v48_v4 = vld [vmem:[%s2455_s0 + $0x18] sm:$0xff] }
   0x2   :  { %v58_v2 = vsel %vm51_vm0, %v47_v0, 0.0  ;;  %v52_v3 = vsel %vm51_vm0, %v45_v1, 0.0  ;;  %v46_v5 = vld [vmem:[%s2455_s0 + $0x8] sm:$0xff] }
   0x3   :  { %59 = vadd.xlane.f32.xlu1 %v58_v2  ;;  %53 = vadd.xlane.f32.xlu0 %v52_v3 }
   0x4   :  { %18 = vsyncpa [#allocation3], 0  ;;  %v61_v6 = vsel %vm51_vm0, %v48_v4, 0.0  ;;  %v55_v7 = vsel %vm51_vm0, %v46_v5, 0.0  ;;  %v1844_v8 = vmov 32.0   ;;  %v164_v35 = vld [vmem:[%s2458_s3 + $0x18] sm:$0xff] }
   0x5   :  { %1716 = vrcp.f32 %v1844_v8  ;;  %193 = vmatpush.msra.mxu0 %v164_v35  ;;  %v163_v36 = vld [vmem:[%s2458_s3 + $0x10] sm:$0xff]  ;;  %v162_v37 = vld [vmem:[%s2458_s3 + $0x8] sm:$0xff]  ;;  %v161_v38 = vld [vmem:[%s2458_s3] sm:$0xff]  ;;  %s1845_s27 = smov 96   ;;  %s1846_s28 = smov 88   ;;  %vm229_vm14 = vcmask 64512  }
   0x6   :  { %s1848_s29 = smov 64   ;;  %s1850_s30 = smov 56  }
   0x7   :  { %194 = vmatpush.msra.mxu0 %v163_v36  ;;  %s1851_s14 = smov 80   ;;  %s1852_s15 = smov 112  }
   0x8   :  { %s1853_s18 = smov 48   ;;  %s1854_s19 = smov 72  }
   0x9   :  { %195 = vmatpush.msra.mxu0 %v162_v37  ;;  %s1855_s20 = smov 104   ;;  %s1856_s24 = smov 40  }
   0xb   :  { %62 = vadd.xlane.f32.xlu1 %v61_v6  ;;  %56 = vadd.xlane.f32.xlu0 %v55_v7  ;;  %v1717_v9 = vpop.eup %1716 }
   0xc   :  { %v65_v10 = vmul.f32 32.0, %v1717_v9  ;;  %vm69_vm1 = vweird.f32 %v1717_v9  ;;  %196 = vmatpush.msra.mxu0 %v161_v38 }
   0xe   :  { %v66_v11 = vsub.f32 1.0, %v65_v10 }
  0x10   :  { %v67_v12 = vmul.f32 %v1717_v9, %v66_v11 }
  0x12   :  { %v68_v13 = vadd.f32 %v1717_v9, %v67_v12 }
  0x14   :  { %v1947_v14 = vsel %vm69_vm1, %v1717_v9, %v68_v13 }
  0x76   :  { %v60_v15 = vpop.xlane.xlu1 %59  ;;  %v54_v16 = vpop.xlane.xlu0 %53 }
  0x77   :  { %v73_v17 = vmul.f32 %v1947_v14, %v60_v15  ;;  %v71_v18 = vmul.f32 %v1947_v14, %v54_v16 }
  0x79   :  { %v1951_v19 = vsub.f32 %v47_v0, %v73_v17  ;;  %v1953_v20 = vsub.f32 %v45_v1, %v71_v18  ;;  %v1708_v1 = vld [vmem:[%s2456_s1] ss:$0 sm:$0xff] }
  0x7b   :  { %v81_v21 = vmul.f32 %v1951_v19, %v1951_v19  ;;  %v79_v22 = vmul.f32 %v1953_v20, %v1953_v20 }
  0x7d   :  { %v89_v23 = vsel %vm51_vm0, %v81_v21, 0.0  ;;  %v83_v24 = vsel %vm51_vm0, %v79_v22, 0.0 }
  0x7e   :  { %v63_v25 = vpop.xlane.xlu1 %62  ;;  %90 = vadd.xlane.f32.xlu0 %v89_v23  ;;  %84 = vadd.xlane.f32.xlu2 %v83_v24  ;;  %v57_v26 = vpop.xlane.xlu0 %56 }
  0x7f   :  { %v74_v27 = vmul.f32 %v1947_v14, %v63_v25  ;;  %v72_v28 = vmul.f32 %v1947_v14, %v57_v26 }
  0x81   :  { %v1963_v29 = vsub.f32 %v48_v4, %v74_v27  ;;  %v1965_v30 = vsub.f32 %v46_v5, %v72_v28  ;;  %v1709_v5 = vld [vmem:[%s2457_s2] ss:$0 sm:$0xff]  ;;  %s1858_s2 = smov [#allocation2]  }
  0x83   :  { %v82_v31 = vmul.f32 %v1963_v29, %v1963_v29  ;;  %v80_v32 = vmul.f32 %v1965_v30, %v1965_v30 }
  0x85   :  { %v92_v33 = vsel %vm51_vm0, %v82_v31, 0.0  ;;  %v86_v34 = vsel %vm51_vm0, %v80_v32, 0.0  ;;  %v1710_v32 = vld [vmem:[%s2459_s4] ss:$0 sm:$0xff]  ;;  %s1847_s4 = smov 120  }
  0x86   :  { %93 = vadd.xlane.f32.xlu1 %v92_v33  ;;  %87 = vadd.xlane.f32.xlu2 %v86_v34 }
  0xf1   :  { %v85_v39 = vpop.xlane.xlu2 %84  ;;  %v91_v40 = vpop.xlane.xlu0 %90 }
  0xf2   :  { %v95_v41 = vmul.f32 %v85_v39, %v1947_v14  ;;  %v97_v42 = vmul.f32 %v91_v40, %v1947_v14 }
  0xf4   :  { %v99_v43 = vadd.f32 1e-05, %v95_v41  ;;  %v101_v44 = vadd.f32 1e-05, %v97_v42 }
  0xf6   :  { %1718 = vrsqrt.f32 %v99_v43  ;;  %vm109_vm3 = vweird.f32 %v99_v43  ;;  %vm129_vm5 = vweird.f32 %v101_v44 }
  0xf7   :  { %1720 = vrsqrt.f32 %v101_v44 }
  0xf9   :  { %v94_v45 = vpop.xlane.xlu1 %93  ;;  %v88_v46 = vpop.xlane.xlu2 %87 }
  0xfa   :  { %v98_v47 = vmul.f32 %v94_v45, %v1947_v14  ;;  %v96_v48 = vmul.f32 %v88_v46, %v1947_v14 }
  0xfc   :  { %v1719_v49 = vpop.eup %1718  ;;  %v102_v50 = vadd.f32 1e-05, %v98_v47  ;;  %v100_v51 = vadd.f32 1e-05, %v96_v48 }
  0xfd   :  { %v1721_v52 = vpop.eup %1720  ;;  %v104_v53 = vmul.f32 %v1719_v49, %v99_v43  ;;  %vm110_vm2 = vweird.f32 %v1719_v49 }
  0xfe   :  { %v124_v54 = vmul.f32 %v1721_v52, %v101_v44  ;;  %1722 = vrsqrt.f32 %v102_v50  ;;  %vm111_vm4 = vmor %vm109_vm3, %vm110_vm2  ;;  %vm130_vm6 = vweird.f32 %v1721_v52  ;;  %vm119_vm9 = vweird.f32 %v100_v51 }
  0xff   :  { %v105_v55 = vmul.f32 %v1719_v49, %v104_v53  ;;  %1724 = vrsqrt.f32 %v100_v51  ;;  %vm131_vm8 = vmor %vm129_vm5, %vm130_vm6  ;;  %vm139_vm11 = vweird.f32 %v102_v50  ;;  %vm302_vm2 = vcmask 130048  }
 0x100   :  { %v125_v57 = vmul.f32 %v1721_v52, %v124_v54 }
 0x101   :  { %v106_v56 = vmul.f32 0.5, %v105_v55 }
 0x102   :  { %v126_v62 = vmul.f32 0.5, %v125_v57  ;;  %v210_v57 = vlaneseq }
 0x103   :  { %v107_v58 = vsub.f32 1.5, %v106_v56 }
 0x104   :  { %v1723_v59 = vpop.eup %1722  ;;  %v127_v6 = vsub.f32 1.5, %v126_v62 }
 0x105   :  { %v1725_v60 = vpop.eup %1724  ;;  %v108_v61 = vmul.f32 %v1719_v49, %v107_v58  ;;  %v134_v63 = vmul.f32 %v1723_v59, %v102_v50  ;;  %vm140_vm12 = vweird.f32 %v1723_v59  ;;  %v211_v58 = vshrl.u32 %v210_v57, 7 }
 0x106   :  { %v114_v0 = vmul.f32 %v1725_v60, %v100_v51  ;;  %vm120_vm7 = vweird.f32 %v1725_v60  ;;  %v128_v12 = vmul.f32 %v1721_v52, %v127_v6  ;;  %vm141_vm13 = vmor %vm139_vm11, %vm140_vm12 }
 0x107   :  { %v112_v2 = vsel %vm111_vm4, %v1719_v49, %v108_v61  ;;  %v135_v7 = vmul.f32 %v1723_v59, %v134_v63  ;;  %vm121_vm10 = vmor %vm119_vm9, %vm120_vm7  ;;  %v1849_v61 = vmov -1e+30  }
 0x108   :  { %v115_v3 = vmul.f32 %v1725_v60, %v114_v0  ;;  %v143_v4 = vmul.f32 %v112_v2, %v1953_v20  ;;  %v132_v18 = vsel %vm131_vm8, %v1721_v52, %v128_v12 }
 0x109   :  { %v136_v13 = vmul.f32 0.5, %v135_v7  ;;  %v145_v23 = vmul.f32 %v132_v18, %v1951_v19 }
 0x10a   :  { %v116_v8 = vmul.f32 0.5, %v115_v3  ;;  %v150_v9 = vmul.f32 %v1708_v1, %v143_v4 }
 0x10b   :  { %v137_v20 = vsub.f32 1.5, %v136_v13  ;;  %v152_v25 = vmul.f32 %v1708_v1, %v145_v23 }
 0x10c   :  { %v117_v10 = vsub.f32 1.5, %v116_v8  ;;  %v157_v11 = vadd.f32 %v1709_v5, %v150_v9 }
 0x10d   :  { %v138_v24 = vmul.f32 %v1723_v59, %v137_v20  ;;  %v159_v27 = vadd.f32 %v1709_v5, %v152_v25 }
 0x10e   :  { %v118_v15 = vmul.f32 %v1725_v60, %v117_v10  ;;  %1572 = vmatmul.msk.f32.vlgmr.msra.gmra.mxu0 %vm51_vm0, %v157_v11 }
 0x10f   :  { %v142_v26 = vsel %vm141_vm13, %v1723_v59, %v138_v24  ;;  %v214_v59 = vand.u32 127, %v210_v57 }
 0x110   :  { %v122_v16 = vsel %vm121_vm10, %v1725_v60, %v118_v15  ;;  %v146_v28 = vmul.f32 %v142_v26, %v1963_v29  ;;  %v212_v60 = vadd.s32 8, %v211_v58 }
 0x111   :  { %v144_v17 = vmul.f32 %v122_v16, %v1965_v30  ;;  %vm215_vm15 = vcmp.ge.s32.totalorder %v211_v58, %v214_v59 }
 0x112   :  { %v153_v30 = vmul.f32 %v1708_v1, %v146_v28  ;;  %vm216_vm1 = vcmp.ge.s32.totalorder %v212_v60, %v214_v59  ;;  %v2064_v62 = vsel %vm215_vm15, 0.0, %v1849_v61 }
 0x113   :  { %v151_v21 = vmul.f32 %v1708_v1, %v144_v17  ;;  %v2066_v63 = vsel %vm216_vm1, 0.0, %v1849_v61 }
 0x114   :  { %v160_v31 = vadd.f32 %v1709_v5, %v153_v30 }
 0x115   :  { %v158_v22 = vadd.f32 %v1709_v5, %v151_v21 }
 0x117   :  { %1573 = vmatmul.msk.f32.gmra.mxu0 %vm51_vm0, %v158_v22 }
 0x11f   :  { %1574 = vmatmul.msk.f32.gmra.mxu0 %vm51_vm0, %v159_v27 }
 0x127   :  { %1575 = vmatmul.msk.f32.gmra.mxu0 %vm51_vm0, %v160_v31 }
 0x18b   :  { %v198_v19 = vpop.f32.mrf.mxu0 }
 0x18c   :  { %v2006_v33 = vadd.f32 %v1710_v32, %v198_v19 }
 0x18e   :  { %225 = vrot.lane.b32.xlu0 %v2006_v33, %s1845_s27  ;;  %v2027_v40 = vmul.f32 0.35355338, %v2006_v33 }
 0x194   :  { %v201_v34 = vpop.f32.mrf.mxu0 }
 0x195   :  { %v2009_v35 = vadd.f32 %v1710_v32, %v201_v34 }
 0x197   :  { %424 = vrot.lane.b32.xlu0 %v2009_v35, %s1846_s28  ;;  %227 = vrot.lane.b32.xlu2 %v2009_v35, %s1845_s27  ;;  %v2016_v37 = vmul.f32 0.35355338, %v2009_v35  ;;  %v2034_v41 = vpack.i.bf16 %v2006_v33, %v2009_v35 }
 0x19c   :  { %v204_v29 = vpop.f32.mrf.mxu0 }
 0x19d   :  { %v2013_v36 = vadd.f32 %v1710_v32, %v204_v29 }
 0x19f   :  { %420 = vrot.lane.b32.xlu0 %v2016_v37, %s1847_s4  ;;  %265 = vrot.lane.b32.xlu2 %v2013_v36, %s1845_s27  ;;  %v2051_v48 = vmul.f32 0.35355338, %v2013_v36 }
 0x1a4   :  { %v207_v38 = vpop.f32.mrf.mxu0 }
 0x1a5   :  { %v2021_v39 = vadd.f32 %v1710_v32, %v207_v38 }
 0x1a7   :  { %267 = vrot.lane.b32.xlu1 %v2021_v39, %s1845_s27  ;;  %461 = vrot.lane.b32.xlu0 %v2013_v36, %s1846_s28  ;;  %v2057_v50 = vmul.f32 0.35355338, %v2021_v39  ;;  %v2084_v20 = vpack.i.bf16 %v2013_v36, %v2021_v39 }
 0x1a8   :  { %422 = vrot.lane.b32.xlu2 %v2006_v33, %s1846_s28 }
 0x1af   :  { %418 = vrot.lane.b32.xlu1 %v2027_v40, %s1847_s4 }
 0x1b0   :  { %463 = vrot.lane.b32.xlu2 %v2021_v39, %s1846_s28 }
 0x1b7   :  { %1669 = vrot.lane.b32.xlu1 %v2034_v41, %s1848_s29 }
 0x1f1   :  { %v228_v42 = vpop.permute.xlu2 %227 }
 0x1f2   :  { %1576 = vmatpush.xpose.msk.msrb.mxu0 %vm229_vm14, %v228_v42  ;;  %1647 = vmatpush.xpose.msk.msra.mxu1 %vm229_vm14, %v228_v42 }
 0x1f9   :  { %v266_v44 = vpop.permute.xlu2 %265 }
 0x200   :  { %v226_v43 = vpop.permute.xlu0 %225 }
 0x201   :  { %1577 = vmatpush.xpose.msk.msrb.mxu0 %vm229_vm14, %v226_v43  ;;  %1648 = vmatpush.xpose.msk.msra.mxu1 %vm229_vm14, %v226_v43 }
 0x202   :  { %v423_v46 = vpop.permute.xlu2 %422 }
 0x204   :  { %1578 = vmatmul.msk.f32.vlgmr.msrb.gmra.mxu0 %vm229_vm14, %v2027_v40  ;;  %1579 = vmatmul.msk.f32.vlgmr.msra.gmra.mxu1 %vm229_vm14, %v2016_v37 }
 0x209   :  { %v425_v45 = vpop.permute.xlu0 %424 }
 0x20a   :  { %1588 = vmatpush.xpose.msk.msrb.mxu1 %vm229_vm14, %v425_v45  ;;  %v464_v55 = vpop.permute.xlu2 %463 }
 0x20e   :  { %1589 = vmatpush.xpose.msk.msrb.mxu1 %vm229_vm14, %v423_v46 }
 0x211   :  { %v421_v51 = vpop.permute.xlu0 %420 }
 0x219   :  { %v268_v47 = vpop.permute.xlu1 %267  ;;  %v462_v56 = vpop.permute.xlu0 %461 }
 0x21a   :  { %1580 = vmatpush.xpose.msk.msra.mxu2 %vm229_vm14, %v268_v47 }
 0x21e   :  { %1581 = vmatpush.xpose.msk.msra.mxu2 %vm229_vm14, %v266_v44 }
 0x221   :  { %v419_v49 = vpop.permute.xlu1 %418  ;;  %1582 = vmatmul.msk.f32.vlgmr.msra.gmra.mxu2 %vm229_vm14, %v2051_v48 }
 0x222   :  { %1590 = vmatmul.msk.f32.vlgmr.msrb.gmra.mxu1 %vm229_vm14, %v419_v49 }
 0x229   :  { %v1670_v52 = vpop.permute.xlu1 %1669  ;;  %1583 = vmatmul.msk.f32.gmra.mxu2 %vm229_vm14, %v2057_v50 }
 0x22a   :  { %1591 = vmatmul.msk.f32.gmra.mxu1 %vm229_vm14, %v421_v51  ;;  %v1671_v53 = vunpack.i.l.bf16 %v1670_v52  ;;  %v1672_v54 = vunpack.i.h.bf16 %v1670_v52 }
 0x22c   :  { %373 = vmatpush.msrb.mxu2 %v1671_v53  ;;  %1649 = vmatpush.msra.mxu3 %v1671_v53 }
 0x22e   :  { %374 = vmatpush.msrb.mxu2 %v1672_v54  ;;  %1650 = vmatpush.msra.mxu3 %v1672_v54 }
 0x230   :  { %1592 = vmatpush.xpose.msk.msra.mxu2 %vm229_vm14, %v464_v55 }
 0x234   :  { %1593 = vmatpush.xpose.msk.msra.mxu2 %vm229_vm14, %v462_v56 }
 0x281   :  { %v257_v0 = vpop.f32.mrf.mxu0  ;;  %v260_v1 = vpop.f32.mrf.mxu1 }
 0x282   :  { %v258_v2 = vadd.f32 %v257_v0, %v2064_v62  ;;  %v261_v3 = vadd.f32 %v260_v1, %v2066_v63 }
 0x284   :  { %v306_v4 = vsel %vm302_vm2, %v261_v3, -inf  ;;  %v303_v5 = vsel %vm302_vm2, %v258_v2, -inf }
 0x285   :  { %307 = vmax.xlane.f32.xlu1 %v306_v4  ;;  %304 = vmax.xlane.f32.xlu2 %v303_v5 }
 0x29f   :  { %v451_v6 = vpop.f32.mrf.mxu1 }
 0x2a0   :  { %v452_v7 = vadd.f32 %v451_v6, %v2064_v62 }
 0x2a2   :  { %v496_v8 = vsel %vm302_vm2, %v452_v7, -inf }
 0x2a3   :  { %497 = vmax.xlane.f32.xlu1 %v496_v8 }
 0x2a4   :  { %v296_v9 = vpop.f32.mrf.mxu2 }
 0x2a5   :  { %v297_v16 = vadd.f32 %v296_v9, %v2064_v62 }
 0x2a7   :  { %v454_v10 = vpop.f32.mrf.mxu1  ;;  %v309_v18 = vsel %vm302_vm2, %v297_v16, -inf }
 0x2a8   :  { %v455_v11 = vadd.f32 %v454_v10, %v2066_v63 }
 0x2aa   :  { %v499_v12 = vsel %vm302_vm2, %v455_v11, -inf }
 0x2ab   :  { %500 = vmax.xlane.f32.xlu0 %v499_v12 }
 0x2ac   :  { %v299_v13 = vpop.f32.mrf.mxu2 }
 0x2ad   :  { %v300_v15 = vadd.f32 %v299_v13, %v2066_v63 }
 0x2af   :  { %v312_v17 = vsel %vm302_vm2, %v300_v15, -inf }
 0x2b0   :  { %313 = vmax.xlane.f32.xlu2 %v312_v17 }
 0x2b3   :  { %310 = vmax.xlane.f32.xlu0 %v309_v18 }
 0x2bc   :  { %1679 = vrot.lane.b32.xlu1 %v2034_v41, %s1850_s30 }
 0x2c7   :  { %1674 = vrot.lane.b32.xlu0 %v2084_v20, %s1848_s29 }
 0x2c8   :  { %457 = vrot.lane.b32.xlu2 %v2051_v48, %s1847_s4 }
 0x2cf   :  { %459 = vrot.lane.b32.xlu0 %v2057_v50, %s1847_s4  ;;  %s1560_s4 = sshll.u32 %s2468_s13, 4  ;;  %s1561_s4 = int_to_ptr.hbm [resolvable:$true] %s1560_s4 }
 0x2f8   :  { %v308_v21 = vpop.xlane.xlu1 %307  ;;  %v305_v22 = vpop.xlane.xlu2 %304 }
 0x2f9   :  { %v316_v23 = vsub.f32 %v261_v3, %v308_v21  ;;  %v315_v24 = vsub.f32 %v258_v2, %v305_v22 }
 0x2fb   :  { %v321_v25 = vmul.f32 1.442695, %v316_v23  ;;  %v319_v26 = vmul.f32 1.442695, %v315_v24 }
 0x2fd   :  { %1726 = vpow2.f32 %v321_v25 }
 0x2fe   :  { %1728 = vpow2.f32 %v319_v26 }
 0x303   :  { %v1727_v27 = vpop.eup %1726 }
 0x304   :  { %v1729_v28 = vpop.eup %1728  ;;  %v330_v30 = vsel %vm302_vm2, %v1727_v27, 0.0 }
 0x305   :  { %v327_v31 = vsel %vm302_vm2, %v1729_v28, 0.0  ;;  %331 = vadd.xlane.f32.xlu0 %v330_v30 }
 0x306   :  { %328 = vadd.xlane.f32.xlu2 %v327_v31 }
 0x316   :  { %v498_v32 = vpop.xlane.xlu1 %497 }
 0x317   :  { %v508_v19 = vsub.f32 %v452_v7, %v498_v32 }
 0x319   :  { %v512_v34 = vmul.f32 1.442695, %v508_v19 }
 0x31b   :  { %1730 = vpow2.f32 %v512_v34 }
 0x31e   :  { %v501_v29 = vpop.xlane.xlu0 %500 }
 0x31f   :  { %v509_v38 = vsub.f32 %v455_v11, %v501_v29 }
 0x321   :  { %v2094_v42 = vpop.eup %1730  ;;  %v514_v43 = vmul.f32 1.442695, %v509_v38 }
 0x322   :  { %v520_v44 = vsel %vm302_vm2, %v2094_v42, 0.0 }
 0x323   :  { %1732 = vpow2.f32 %v514_v43  ;;  %v314_v45 = vpop.xlane.xlu2 %313  ;;  %521 = vadd.xlane.f32.xlu0 %v520_v44 }
 0x324   :  { %v318_v46 = vsub.f32 %v300_v15, %v314_v45 }
 0x326   :  { %v325_v47 = vmul.f32 1.442695, %v318_v46  ;;  %v311_v49 = vpop.xlane.xlu0 %310 }
 0x327   :  { %v317_v51 = vsub.f32 %v297_v16, %v311_v49 }
 0x328   :  { %1734 = vpow2.f32 %v325_v47  ;;  %v1600_v47 = vld [vmem:[%s2460_s5 + $0x8] sm:$0xff] }
 0x329   :  { %v2098_v52 = vpop.eup %1732  ;;  %v323_v53 = vmul.f32 1.442695, %v317_v51  ;;  %639 = vmatpush.msra.mxu1 %v1600_v47 }
 0x32a   :  { %v523_v54 = vsel %vm302_vm2, %v2098_v52, 0.0 }
 0x32b   :  { %1736 = vpow2.f32 %v323_v53  ;;  %524 = vadd.xlane.f32.xlu2 %v523_v54  ;;  %v458_v1 = vpop.permute.xlu2 %457 }
 0x32e   :  { %v1735_v55 = vpop.eup %1734  ;;  %v1680_v4 = vpop.permute.xlu1 %1679 }
 0x32f   :  { %v336_v57 = vsel %vm302_vm2, %v1735_v55, 0.0  ;;  %v1681_v8 = vunpack.i.l.bf16 %v1680_v4  ;;  %v1682_v10 = vunpack.i.h.bf16 %v1680_v4 }
 0x331   :  { %v1737_v56 = vpop.eup %1736 }
 0x332   :  { %v333_v58 = vsel %vm302_vm2, %v1737_v56, 0.0 }
 0x333   :  { %337 = vadd.xlane.f32.xlu2 %v336_v57  ;;  %334 = vadd.xlane.f32.xlu1 %v333_v58 }
 0x337   :  { %698 = vrot.lane.b32.xlu0 %v2006_v33, %s1851_s14 }
 0x339   :  { %v1675_v59 = vpop.permute.xlu0 %1674 }
 0x33a   :  { %v1676_v60 = vunpack.i.l.bf16 %v1675_v59  ;;  %v1677_v61 = vunpack.i.h.bf16 %v1675_v59 }
 0x33c   :  { %408 = vmatpush.msrb.mxu3 %v1676_v60 }
 0x33e   :  { %409 = vmatpush.msrb.mxu3 %v1677_v61 }
 0x33f   :  { %739 = vrot.lane.b32.xlu0 %v2021_v39, %s1851_s14 }
 0x341   :  { %v460_v0 = vpop.permute.xlu0 %459 }
 0x34b   :  { %700 = vrot.lane.b32.xlu2 %v2009_v35, %s1851_s14 }
 0x34c   :  { %694 = vrot.lane.b32.xlu1 %v2027_v40, %s1852_s15 }
 0x353   :  { %1684 = vrot.lane.b32.xlu2 %v2084_v20, %s1850_s30 }
 0x354   :  { %696 = vrot.lane.b32.xlu1 %v2016_v37, %s1852_s15 }
 0x378   :  { %v332_v2 = vpop.xlane.xlu0 %331 }
 0x379   :  { %v329_v3 = vpop.xlane.xlu2 %328  ;;  %1738 = vrcp.f32 %v332_v2 }
 0x37a   :  { %1740 = vrcp.f32 %v329_v3 }
 0x37f   :  { %v1739_v5 = vpop.eup %1738 }
 0x380   :  { %v1741_v6 = vpop.eup %1740  ;;  %v344_v7 = vmul.f32 %v1739_v5, %v1727_v27 }
 0x381   :  { %v343_v9 = vmul.f32 %v1741_v6, %v1729_v28 }
 0x382   :  { %1585 = vmatmul.msk.f32.vlgmr.msra.gmra.mxu3 %vm302_vm2, %v344_v7 }
 0x383   :  { %1584 = vmatmul.msk.f32.vlgmr.msrb.gmra.mxu2 %vm302_vm2, %v343_v9  ;;  %566 = vmatpush.msra.mxu3 %v1681_v8 }
 0x385   :  { %567 = vmatpush.msra.mxu3 %v1682_v10 }
 0x38b   :  { %1594 = vmatmul.msk.f32.vlgmr.msra.gmra.mxu2 %vm229_vm14, %v458_v1 }
 0x393   :  { %1595 = vmatmul.msk.f32.gmra.mxu2 %vm229_vm14, %v460_v0 }
 0x396   :  { %v522_v12 = vpop.xlane.xlu0 %521 }
 0x39e   :  { %v525_v11 = vpop.xlane.xlu2 %524 }
 0x3a6   :  { %v338_v13 = vpop.xlane.xlu2 %337  ;;  %v335_v15 = vpop.xlane.xlu1 %334 }
 0x3a7   :  { %1742 = vrcp.f32 %v335_v15 }
 0x3a8   :  { %1744 = vrcp.f32 %v338_v13 }
 0x3a9   :  { %v699_v16 = vpop.permute.xlu0 %698  ;;  %1746 = vrcp.f32 %v522_v12 }
 0x3aa   :  { %1748 = vrcp.f32 %v525_v11 }
 0x3ad   :  { %v1743_v17 = vpop.eup %1742 }
 0x3ae   :  { %v701_v18 = vpop.permute.xlu2 %700  ;;  %v345_v21 = vmul.f32 %v1743_v17, %v1737_v56  ;;  %v1745_v23 = vpop.eup %1744 }
 0x3af   :  { %v346_v26 = vmul.f32 %v1745_v23, %v1735_v55  ;;  %v1747_v28 = vpop.eup %1746 }
 0x3b0   :  { %1586 = vmatmul.msk.f32.vlgmr.msrb.gmra.mxu3 %vm302_vm2, %v345_v21  ;;  %v536_v30 = vmul.f32 %v1747_v28, %v2094_v42  ;;  %v1749_v31 = vpop.eup %1748 }
 0x3b1   :  { %v740_v22 = vpop.permute.xlu0 %739  ;;  %1609 = vmatpush.xpose.msk.msrb.mxu3 %vm229_vm14, %v701_v18  ;;  %v537_v32 = vmul.f32 %v1749_v31, %v2098_v52 }
 0x3b2   :  { %1613 = vmatpush.xpose.msk.msra.mxu0 %vm229_vm14, %v740_v22 }
 0x3b5   :  { %1610 = vmatpush.xpose.msk.msrb.mxu3 %vm229_vm14, %v699_v16 }
 0x3b6   :  { %v1685_v24 = vpop.permute.xlu2 %1684 }
 0x3b7   :  { %v1686_v25 = vunpack.i.l.bf16 %v1685_v24  ;;  %v1687_v27 = vunpack.i.h.bf16 %v1685_v24 }
 0x3b8   :  { %1587 = vmatmul.msk.f32.gmra.mxu3 %vm302_vm2, %v346_v26 }
 0x3b9   :  { %601 = vmatpush.msrb.mxu2 %v1686_v25 }
 0x3bb   :  { %602 = vmatpush.msrb.mxu2 %v1687_v27 }
 0x3be   :  { %v695_v19 = vpop.permute.xlu1 %694 }
 0x3c0   :  { %1596 = vmatmul.msk.f32.vlgmr.msra.gmra.mxu3 %vm302_vm2, %v536_v30 }
 0x3c6   :  { %v697_v34 = vpop.permute.xlu1 %696 }
 0x3c8   :  { %1597 = vmatmul.msk.f32.gmra.mxu3 %vm302_vm2, %v537_v32 }
 0x3d0   :  { %1611 = vmatmul.msk.f32.vlgmr.msrb.gmra.mxu3 %vm229_vm14, %v695_v19 }
 0x3d8   :  { %1612 = vmatmul.msk.f32.gmra.mxu3 %vm229_vm14, %v697_v34 }
 0x405   :  { %v2142_v49 = vpop.f32.mrf.mxu3 }
 0x406   :  { %v2131_v29 = vpop.f32.mrf.mxu2 }
 0x40e   :  { %v490_v38 = vpop.f32.mrf.mxu2 }
 0x40f   :  { %v491_v43 = vadd.f32 %v490_v38, %v2064_v62 }
 0x411   :  { %v502_v42 = vsel %vm302_vm2, %v491_v43, -inf }
 0x412   :  { %503 = vmax.xlane.f32.xlu1 %v502_v42 }
 0x416   :  { %v493_v44 = vpop.f32.mrf.mxu2 }
 0x417   :  { %v494_v45 = vadd.f32 %v493_v44, %v2066_v63 }
 0x419   :  { %v505_v46 = vsel %vm302_vm2, %v494_v45, -inf }
 0x41a   :  { %506 = vmax.xlane.f32.xlu0 %v505_v46 }
 0x42b   :  { %737 = vrot.lane.b32.xlu1 %v2013_v36, %s1851_s14 }
 0x42e   :  { %1689 = vrot.lane.b32.xlu0 %v2034_v41, %s1853_s18 }
 0x433   :  { %v2146_v51 = vpop.f32.mrf.mxu3 }
 0x43b   :  { %v2148_v52 = vpop.f32.mrf.mxu3 }
 0x443   :  { %v569_v53 = vpop.f32.mrf.mxu3 }
 0x444   :  { %1601 = vmatmul.msk.f32.vlgmr.msra.gmra.mxu1 %vm229_vm14, %v569_v53 }
 0x44b   :  { %v572_v54 = vpop.f32.mrf.mxu3 }
 0x44c   :  { %1602 = vmatmul.msk.f32.gmra.mxu1 %vm229_vm14, %v572_v54 }
 0x453   :  { %v727_v55 = vpop.f32.mrf.mxu3 }
 0x454   :  { %v728_v56 = vadd.f32 %v727_v55, %v2064_v62 }
 0x456   :  { %v772_v57 = vsel %vm302_vm2, %v728_v56, -inf }
 0x457   :  { %773 = vmax.xlane.f32.xlu2 %v772_v57  ;;  %v1621_v57 = vld [vmem:[%s2460_s5 + $0x10] sm:$0xff] }
 0x458   :  { %915 = vmatpush.msrb.mxu1 %v1621_v57 }
 0x45b   :  { %v730_v58 = vpop.f32.mrf.mxu3 }
 0x45c   :  { %v731_v59 = vadd.f32 %v730_v58, %v2066_v63 }
 0x45e   :  { %v775_v60 = vsel %vm302_vm2, %v731_v59, -inf }
 0x45f   :  { %776 = vmax.xlane.f32.xlu1 %v775_v60 }
 0x46f   :  { %733 = vrot.lane.b32.xlu2 %v2051_v48, %s1852_s15 }
 0x485   :  { %v504_v61 = vpop.xlane.xlu1 %503 }
 0x486   :  { %v510_v0 = vsub.f32 %v491_v43, %v504_v61 }
 0x488   :  { %v516_v1 = vmul.f32 1.442695, %v510_v0 }
 0x48a   :  { %1750 = vpow2.f32 %v516_v1 }
 0x48d   :  { %v507_v2 = vpop.xlane.xlu0 %506 }
 0x48e   :  { %v511_v3 = vsub.f32 %v494_v45, %v507_v2 }
 0x490   :  { %v1751_v4 = vpop.eup %1750  ;;  %v518_v5 = vmul.f32 1.442695, %v511_v3 }
 0x491   :  { %v526_v6 = vsel %vm302_vm2, %v1751_v4, 0.0 }
 0x492   :  { %1752 = vpow2.f32 %v518_v5  ;;  %527 = vadd.xlane.f32.xlu0 %v526_v6 }
 0x498   :  { %v1753_v7 = vpop.eup %1752 }
 0x499   :  { %v529_v8 = vsel %vm302_vm2, %v1753_v7, 0.0 }
 0x49a   :  { %530 = vadd.xlane.f32.xlu1 %v529_v8 }
 0x49d   :  { %v738_v9 = vpop.permute.xlu1 %737 }
 0x49e   :  { %1614 = vmatpush.xpose.msk.msra.mxu0 %vm229_vm14, %v738_v9 }
 0x4a0   :  { %v1690_v10 = vpop.permute.xlu0 %1689 }
 0x4a1   :  { %v1691_v11 = vunpack.i.l.bf16 %v1690_v10  ;;  %v1692_v12 = vunpack.i.h.bf16 %v1690_v10 }
 0x4a3   :  { %842 = vmatpush.msra.mxu3 %v1691_v11 }
 0x4a5   :  { %843 = vmatpush.msra.mxu3 %v1692_v12 }
 0x4a6   :  { %939 = vrot.lane.b32.xlu0 %v2009_v35, %s1854_s19 }
 0x4ae   :  { %937 = vrot.lane.b32.xlu0 %v2006_v33, %s1854_s19 }
 0x4b6   :  { %933 = vrot.lane.b32.xlu0 %v2027_v40, %s1855_s20 }
 0x4be   :  { %976 = vrot.lane.b32.xlu0 %v2013_v36, %s1854_s19 }
 0x4c6   :  { %972 = vrot.lane.b32.xlu0 %v2051_v48, %s1855_s20  ;;  %v417_v48 = vld [vmem:[%s2460_s5] sm:$0xff] }
 0x4c7   :  { %680 = vmatpush.msra.mxu2 %v417_v48 }
 0x4ca   :  { %v774_v13 = vpop.xlane.xlu2 %773 }
 0x4cb   :  { %v784_v15 = vsub.f32 %v728_v56, %v774_v13 }
 0x4cd   :  { %v788_v16 = vmul.f32 1.442695, %v784_v15 }
 0x4cf   :  { %1754 = vpow2.f32 %v788_v16 }
 0x4d2   :  { %v777_v17 = vpop.xlane.xlu1 %776  ;;  %v734_v18 = vpop.permute.xlu2 %733 }
 0x4d3   :  { %v785_v21 = vsub.f32 %v731_v59, %v777_v17  ;;  %1615 = vmatmul.msk.f32.vlgmr.msra.gmra.mxu0 %vm229_vm14, %v734_v18 }
 0x4d5   :  { %v1755_v22 = vpop.eup %1754  ;;  %v790_v35 = vmul.f32 1.442695, %v785_v21 }
 0x4d6   :  { %v796_v33 = vsel %vm302_vm2, %v1755_v22, 0.0 }
 0x4d7   :  { %1756 = vpow2.f32 %v790_v35  ;;  %797 = vadd.xlane.f32.xlu1 %v796_v33 }
 0x4dd   :  { %v1757_v40 = vpop.eup %1756 }
 0x4de   :  { %v799_v36 = vsel %vm302_vm2, %v1757_v40, 0.0 }
 0x4df   :  { %800 = vadd.xlane.f32.xlu2 %v799_v36 }
 0x4f0   :  { %735 = vrot.lane.b32.xlu1 %v2057_v50, %s1852_s15 }
 0x4f8   :  { %978 = vrot.lane.b32.xlu1 %v2021_v39, %s1854_s19 }
 0x500   :  { %935 = vrot.lane.b32.xlu1 %v2016_v37, %s1855_s20 }
 0x505   :  { %v528_v23 = vpop.xlane.xlu0 %527 }
 0x506   :  { %1758 = vrcp.f32 %v528_v23 }
 0x508   :  { %974 = vrot.lane.b32.xlu1 %v2057_v50, %s1855_s20 }
 0x50c   :  { %v1759_v24 = vpop.eup %1758 }
 0x50d   :  { %v538_v25 = vmul.f32 %v1759_v24, %v1751_v4  ;;  %v531_v26 = vpop.xlane.xlu1 %530 }
 0x50e   :  { %1760 = vrcp.f32 %v531_v26 }
 0x50f   :  { %1598 = vmatmul.msk.f32.vlgmr.msrb.gmra.mxu2 %vm302_vm2, %v538_v25 }
 0x514   :  { %v1761_v27 = vpop.eup %1760 }
 0x515   :  { %v539_v28 = vmul.f32 %v1761_v27, %v1753_v7 }
 0x517   :  { %1599 = vmatmul.msk.f32.gmra.mxu2 %vm302_vm2, %v539_v28 }
 0x518   :  { %v940_v30 = vpop.permute.xlu0 %939 }
 0x519   :  { %1626 = vmatpush.xpose.msk.msrb.mxu2 %vm229_vm14, %v940_v30 }
 0x51f   :  { %1605 = vmatmul.msk.f32.vlgmr.msra.gmra.mxu2 %vm229_vm14, %v2131_v29 }
 0x520   :  { %v938_v37 = vpop.permute.xlu0 %937 }
 0x521   :  { %1627 = vmatpush.xpose.msk.msrb.mxu2 %vm229_vm14, %v938_v37 }
 0x527   :  { %1606 = vmatmul.msk.f32.gmra.mxu2 %vm229_vm14, %v2142_v49 }
 0x528   :  { %v934_v39 = vpop.permute.xlu0 %933 }
 0x52f   :  { %1607 = vmatmul.msk.f32.gmra.mxu2 %vm229_vm14, %v2146_v51 }
 0x530   :  { %v977_v45 = vpop.permute.xlu0 %976 }
 0x537   :  { %1608 = vmatmul.msk.f32.gmra.mxu2 %vm229_vm14, %v2148_v52 }
 0x538   :  { %v973_v47 = vpop.permute.xlu0 %972 }
 0x53f   :  { %1628 = vmatmul.msk.f32.vlgmr.msrb.gmra.mxu2 %vm229_vm14, %v934_v39 }
 0x54a   :  { %v798_v50 = vpop.xlane.xlu1 %797 }
 0x54b   :  { %1762 = vrcp.f32 %v798_v50 }
 0x550   :  { %v766_v31 = vpop.f32.mrf.mxu0 }
 0x551   :  { %v1763_v32 = vpop.eup %1762  ;;  %v767_v19 = vadd.f32 %v766_v31, %v2064_v62 }
 0x552   :  { %v812_v34 = vmul.f32 %v1763_v32, %v1755_v22  ;;  %v801_v29 = vpop.xlane.xlu2 %800 }
 0x553   :  { %1764 = vrcp.f32 %v801_v29  ;;  %v778_v38 = vsel %vm302_vm2, %v767_v19, -inf }
 0x554   :  { %1617 = vmatmul.msk.f32.vlgmr.msra.gmra.mxu3 %vm302_vm2, %v812_v34  ;;  %779 = vmax.xlane.f32.xlu2 %v778_v38 }
 0x559   :  { %v1765_v43 = vpop.eup %1764 }
 0x55a   :  { %v813_v42 = vmul.f32 %v1765_v43, %v1757_v40 }
 0x55c   :  { %1618 = vmatmul.msk.f32.gmra.mxu3 %vm302_vm2, %v813_v42 }
 0x562   :  { %v736_v44 = vpop.permute.xlu1 %735 }
 0x563   :  { %1616 = vmatmul.msk.f32.gmra.mxu0 %vm229_vm14, %v736_v44 }
 0x56a   :  { %v979_v46 = vpop.permute.xlu1 %978 }
 0x56b   :  { %1630 = vmatpush.xpose.msk.msrb.mxu3 %vm229_vm14, %v979_v46 }
 0x56f   :  { %1631 = vmatpush.xpose.msk.msrb.mxu3 %vm229_vm14, %v977_v45 }
 0x572   :  { %v936_v49 = vpop.permute.xlu1 %935  ;;  %1632 = vmatmul.msk.f32.vlgmr.msrb.gmra.mxu3 %vm229_vm14, %v973_v47 }
 0x573   :  { %1629 = vmatmul.msk.f32.gmra.mxu2 %vm229_vm14, %v936_v49 }
 0x57a   :  { %v975_v51 = vpop.permute.xlu1 %974 }
 0x57b   :  { %1633 = vmatmul.msk.f32.gmra.mxu3 %vm229_vm14, %v975_v51 }
 0x592   :  { %v604_v52 = vpop.f32.mrf.mxu2 }
 0x593   :  { %1603 = vmatmul.msk.f32.gmra.mxu1 %vm229_vm14, %v604_v52 }
 0x59a   :  { %v607_v53 = vpop.f32.mrf.mxu2 }
 0x59b   :  { %1604 = vmatmul.msk.f32.gmra.mxu1 %vm229_vm14, %v607_v53 }
 0x5a2   :  { %v2202_v54 = vpop.f32.mrf.mxu2 }
 0x5aa   :  { %v2204_v55 = vpop.f32.mrf.mxu2 }
 0x5b2   :  { %v2206_v56 = vpop.f32.mrf.mxu2 }
 0x5ba   :  { %v2211_v58 = vpop.f32.mrf.mxu2 }
 0x5c2   :  { %v966_v59 = vpop.f32.mrf.mxu2 }
 0x5c3   :  { %v967_v60 = vadd.f32 %v966_v59, %v2064_v62 }
 0x5c5   :  { %v1011_v61 = vsel %vm302_vm2, %v967_v60, -inf }
 0x5c6   :  { %1012 = vmax.xlane.f32.xlu1 %v1011_v61 }
 0x5c7   :  { %v780_v0 = vpop.xlane.xlu2 %779 }
 0x5c8   :  { %v786_v1 = vsub.f32 %v767_v19, %v780_v0 }
 0x5ca   :  { %v792_v2 = vmul.f32 1.442695, %v786_v1 }
 0x5cc   :  { %1766 = vpow2.f32 %v792_v2 }
 0x5d2   :  { %v2215_v3 = vpop.eup %1766 }
 0x5d3   :  { %v802_v4 = vsel %vm302_vm2, %v2215_v3, 0.0 }
 0x5d4   :  { %803 = vadd.xlane.f32.xlu2 %v802_v4 }
 0x5d7   :  { %v845_v5 = vpop.f32.mrf.mxu3 }
 0x5d8   :  { %1622 = vmatmul.msk.f32.vlgmr.msrb.gmra.mxu1 %vm229_vm14, %v845_v5 }
 0x5df   :  { %v848_v6 = vpop.f32.mrf.mxu3 }
 0x5e0   :  { %v769_v7 = vpop.f32.mrf.mxu0  ;;  %1623 = vmatmul.msk.f32.gmra.mxu1 %vm229_vm14, %v848_v6 }
 0x5e1   :  { %v770_v8 = vadd.f32 %v769_v7, %v2066_v63 }
 0x5e3   :  { %v781_v9 = vsel %vm302_vm2, %v770_v8, -inf }
 0x5e4   :  { %782 = vmax.xlane.f32.xlu0 %v781_v9 }
 0x5f5   :  { %v1005_v12 = vpop.f32.mrf.mxu3 }
 0x5f6   :  { %v969_v10 = vpop.f32.mrf.mxu2  ;;  %v1006_v15 = vadd.f32 %v1005_v12, %v2064_v62 }
 0x5f7   :  { %v970_v11 = vadd.f32 %v969_v10, %v2066_v63 }
 0x5f8   :  { %v1017_v16 = vsel %vm302_vm2, %v1006_v15, -inf }
 0x5f9   :  { %v1014_v13 = vsel %vm302_vm2, %v970_v11, -inf }
 0x5fa   :  { %1015 = vmax.xlane.f32.xlu2 %v1014_v13  ;;  %v1638_v13 = vld [vmem:[%s2460_s5 + $0x18] sm:$0xff] }
 0x5fb   :  { %1154 = vmatpush.msra.mxu3 %v1638_v13 }
 0x5fe   :  { %v1008_v17 = vpop.f32.mrf.mxu3 }
 0x5ff   :  { %v1009_v18 = vadd.f32 %v1008_v17, %v2066_v63 }
 0x601   :  { %v1020_v21 = vsel %vm302_vm2, %v1009_v18, -inf }
 0x602   :  { %1018 = vmax.xlane.f32.xlu2 %v1017_v16 }
 0x60a   :  { %1021 = vmax.xlane.f32.xlu2 %v1020_v21 }
 0x622   :  { %1694 = vrot.lane.b32.xlu2 %v2084_v20, %s1853_s18 }
 0x62a   :  { %1704 = vrot.lane.b32.xlu2 %v2084_v20, %s1856_s24 }
 0x639   :  { %v1013_v22 = vpop.xlane.xlu1 %1012 }
 0x63a   :  { %v1023_v35 = vsub.f32 %v967_v60, %v1013_v22  ;;  %v641_v22 = vpop.f32.mrf.mxu1 }
 0x63c   :  { %v1027_v33 = vmul.f32 1.442695, %v1023_v35 }
 0x63e   :  { %1768 = vpow2.f32 %v1027_v33 }
 0x642   :  { %v644_v35 = vpop.f32.mrf.mxu1 }
 0x644   :  { %v1769_v62 = vpop.eup %1768 }
 0x645   :  { %v1035_v40 = vsel %vm302_vm2, %v1769_v62, 0.0 }
 0x646   :  { %1036 = vadd.xlane.f32.xlu1 %v1035_v40 }
 0x647   :  { %v804_v25 = vpop.xlane.xlu2 %803 }
 0x64a   :  { %v647_v33 = vpop.f32.mrf.mxu1 }
 0x657   :  { %v783_v36 = vpop.xlane.xlu0 %782 }
 0x658   :  { %v787_v48 = vsub.f32 %v770_v8, %v783_v36  ;;  %v683_v36 = vadd.f32 %v2202_v54, %v641_v22  ;;  %v1289_v22 = vld [vmem:[%s2464_s9 + $0x8] sm:$0xff] }
 0x65a   :  { %v794_v63 = vmul.f32 1.442695, %v787_v48 }
 0x65c   :  { %1770 = vpow2.f32 %v794_v63 }
 0x662   :  { %v1771_v23 = vpop.eup %1770 }
 0x663   :  { %v805_v24 = vsel %vm302_vm2, %v1771_v23, 0.0 }
 0x664   :  { %806 = vadd.xlane.f32.xlu0 %v805_v24  ;;  %v1711_v24 = vld [vmem:[%s2461_s6] ss:$0 sm:$0xff]  ;;  %s1859_s6 = smov 128  }
 0x66d   :  { %v1016_v26 = vpop.xlane.xlu2 %1015 }
 0x66e   :  { %v1024_v27 = vsub.f32 %v970_v11, %v1016_v26 }
 0x670   :  { %v1029_v20 = vmul.f32 1.442695, %v1024_v27 }
 0x672   :  { %1772 = vpow2.f32 %v1029_v20  ;;  %v686_v20 = vadd.f32 %v2204_v55, %v644_v35  ;;  %v1288_v35 = vld [vmem:[%s2464_s9] sm:$0xff] }
 0x675   :  { %v1019_v28 = vpop.xlane.xlu2 %1018 }
 0x676   :  { %v1025_v30 = vsub.f32 %v1006_v15, %v1019_v28 }
 0x678   :  { %v1773_v37 = vpop.eup %1772  ;;  %v1031_v39 = vmul.f32 1.442695, %v1025_v30  ;;  %1699 = vrot.lane.b32.xlu0 %v2034_v41, %s1856_s24 }
 0x679   :  { %v1038_v50 = vsel %vm302_vm2, %v1773_v37, 0.0 }
 0x67a   :  { %1774 = vpow2.f32 %v1031_v39  ;;  %1039 = vadd.xlane.f32.xlu1 %v1038_v50  ;;  %v1815_v50 = vld [vmem:[%s2455_s0 + $0x8] sm:$0xff] }
 0x67b   :  { %1776 = vrcp.f32 %v804_v25  ;;  %v1814_v25 = vld [vmem:[%s2455_s0] sm:$0xff] }
 0x67d   :  { %v1022_v31 = vpop.xlane.xlu2 %1021 }
 0x67e   :  { %v1026_v45 = vsub.f32 %v1009_v18, %v1022_v31 }
 0x680   :  { %v1775_v32 = vpop.eup %1774  ;;  %v1033_v47 = vmul.f32 1.442695, %v1026_v45 }
 0x681   :  { %v1041_v19 = vsel %vm302_vm2, %v1775_v32, 0.0  ;;  %v1777_v29 = vpop.eup %1776 }
 0x682   :  { %1042 = vadd.xlane.f32.xlu1 %v1041_v19  ;;  %v814_v42 = vmul.f32 %v1777_v29, %v2215_v3  ;;  %1778 = vpow2.f32 %v1033_v47 }
 0x685   :  { %v1695_v34 = vpop.permute.xlu2 %1694 }
 0x686   :  { %v1696_v38 = vunpack.i.l.bf16 %v1695_v34  ;;  %v1697_v43 = vunpack.i.h.bf16 %v1695_v34  ;;  %v689_v34 = vadd.f32 %v2206_v56, %v647_v33 }
 0x688   :  { %877 = vmatpush.msrb.mxu0 %v1696_v38  ;;  %v1779_v49 = vpop.eup %1778 }
 0x689   :  { %v1044_v51 = vsel %vm302_vm2, %v1779_v49, 0.0 }
 0x68a   :  { %878 = vmatpush.msrb.mxu0 %v1697_v43 }
 0x68b   :  { %1619 = vmatmul.msk.f32.vlgmr.msrb.gmra.mxu0 %vm302_vm2, %v814_v42  ;;  %v1816_v42 = vld [vmem:[%s2455_s0 + $0x10] sm:$0xff] }
 0x68d   :  { %v1705_v41 = vpop.permute.xlu2 %1704 }
 0x68e   :  { %v1706_v44 = vunpack.i.l.bf16 %v1705_v41  ;;  %v1707_v46 = vunpack.i.h.bf16 %v1705_v41 }
 0x690   :  { %1116 = vmatpush.msra.mxu2 %v1706_v44 }
 0x692   :  { %1117 = vmatpush.msra.mxu2 %v1707_v46 }
 0x6a2   :  { %1045 = vadd.xlane.f32.xlu0 %v1044_v51 }
 0x6b9   :  { %v1037_v59 = vpop.xlane.xlu1 %1036 }
 0x6d7   :  { %v807_v52 = vpop.xlane.xlu0 %806 }
 0x6d8   :  { %1780 = vrcp.f32 %v807_v52  ;;  %v1817_v52 = vld [vmem:[%s2455_s0 + $0x18] sm:$0xff] }
 0x6d9   :  { %1782 = vrcp.f32 %v1037_v59 }
 0x6de   :  { %v1781_v53 = vpop.eup %1780 }
 0x6df   :  { %v815_v57 = vmul.f32 %v1781_v53, %v1771_v23  ;;  %v1783_v61 = vpop.eup %1782 }
 0x6e0   :  { %v1051_v3 = vmul.f32 %v1783_v61, %v1769_v62  ;;  %v650_v62 = vpop.f32.mrf.mxu1 }
 0x6e1   :  { %1620 = vmatmul.msk.f32.gmra.mxu0 %vm302_vm2, %v815_v57  ;;  %v692_v47 = vadd.f32 %v2211_v58, %v650_v62 }
 0x6e8   :  { %v917_v40 = vpop.f32.mrf.mxu1 }
 0x6e9   :  { %v929_v48 = vadd.f32 %v917_v40, %v683_v36 }
 0x6ea   :  { %v1700_v60 = vpop.permute.xlu0 %1699 }
 0x6eb   :  { %v1701_v0 = vunpack.i.l.bf16 %v1700_v60  ;;  %v1702_v1 = vunpack.i.h.bf16 %v1700_v60 }
 0x6ed   :  { %v1040_v2 = vpop.xlane.xlu1 %1039  ;;  %1081 = vmatpush.msra.mxu0 %v1701_v0 }
 0x6ee   :  { %1784 = vrcp.f32 %v1040_v2 }
 0x6ef   :  { %1082 = vmatpush.msra.mxu0 %v1702_v1 }
 0x6f0   :  { %1634 = vmatmul.msk.f32.vlgmr.msra.gmra.mxu0 %vm302_vm2, %v1051_v3  ;;  %v920_v27 = vpop.f32.mrf.mxu1 }
 0x6f1   :  { %v930_v30 = vadd.f32 %v920_v27, %v686_v20 }
 0x6f4   :  { %v1785_v4 = vpop.eup %1784 }
 0x6f5   :  { %v1043_v5 = vpop.xlane.xlu1 %1042  ;;  %v1052_v6 = vmul.f32 %v1785_v4, %v1773_v37 }
 0x6f6   :  { %1786 = vrcp.f32 %v1043_v5 }
 0x6f8   :  { %1635 = vmatmul.msk.f32.gmra.mxu0 %vm302_vm2, %v1052_v6 }
 0x6fc   :  { %v1787_v7 = vpop.eup %1786 }
 0x6fd   :  { %v1053_v8 = vmul.f32 %v1787_v7, %v1775_v32 }
 0x6ff   :  { %1636 = vmatmul.msk.f32.vlgmr.msra.gmra.mxu2 %vm302_vm2, %v1053_v8 }
 0x708   :  { %v880_v9 = vpop.f32.mrf.mxu0 }
 0x709   :  { %1624 = vmatmul.msk.f32.gmra.mxu1 %vm229_vm14, %v880_v9 }
 0x715   :  { %v1046_v10 = vpop.xlane.xlu0 %1045 }
 0x716   :  { %1788 = vrcp.f32 %v1046_v10 }
 0x71c   :  { %v1789_v11 = vpop.eup %1788 }
 0x71d   :  { %v1054_v12 = vmul.f32 %v1789_v11, %v1779_v49 }
 0x71f   :  { %1637 = vmatmul.msk.f32.gmra.mxu2 %vm302_vm2, %v1054_v12 }
 0x75e   :  { %v883_v15 = vpop.f32.mrf.mxu0 }
 0x75f   :  { %1625 = vmatmul.msk.f32.gmra.mxu1 %vm229_vm14, %v883_v15 }
 0x76d   :  { %v1084_v16 = vpop.f32.mrf.mxu0 }
 0x76e   :  { %1639 = vmatmul.msk.f32.vlgmr.msra.gmra.mxu3 %vm229_vm14, %v1084_v16 }
 0x775   :  { %v1087_v17 = vpop.f32.mrf.mxu0 }
 0x776   :  { %1640 = vmatmul.msk.f32.gmra.mxu3 %vm229_vm14, %v1087_v17 }
 0x782   :  { %v1119_v18 = vpop.f32.mrf.mxu2 }
 0x783   :  { %1641 = vmatmul.msk.f32.gmra.mxu3 %vm229_vm14, %v1119_v18  ;;  %v1291_v18 = vld [vmem:[%s2464_s9 + $0x18] sm:$0xff] }
 0x784   :  { %1320 = vmatpush.msrb.mxu0 %v1291_v18  ;;  %v1511_v18 = vld [vmem:[%s2466_s11 + $0x70] sm:$0xff] }
 0x786   :  { %v923_v55 = vpop.f32.mrf.mxu1 }
 0x787   :  { %v931_v29 = vadd.f32 %v923_v55, %v689_v34  ;;  %v1713_v34 = vld [vmem:[%s2463_s8] ss:$0 sm:$0xff] }
 0x7a2   :  { %v1122_v21 = vpop.f32.mrf.mxu2 }
 0x7a3   :  { %1642 = vmatmul.msk.f32.gmra.mxu3 %vm229_vm14, %v1122_v21  ;;  %v1290_v21 = vld [vmem:[%s2464_s9 + $0x10] sm:$0xff] }
 0x7a4   :  { %1321 = vmatpush.msrb.mxu0 %v1290_v21  ;;  %v2351_v21 = vld [vmem:[%s2465_s10] ss:$0 sm:$0xff]  ;;  %s1860_s10 = smov 8  }
 0x7a6   :  { %1322 = vmatpush.msrb.mxu0 %v1289_v22  ;;  %v1509_v22 = vld [vmem:[%s2466_s11 + $0x60] sm:$0xff] }
 0x7a8   :  { %1323 = vmatpush.msrb.mxu0 %v1288_v35 }
 0x7dc   :  { %v926_v46 = vpop.f32.mrf.mxu1 }
 0x7dd   :  { %v932_v49 = vadd.f32 %v926_v46, %v692_v47 }
 0x7f1   :  { %v1156_v63 = vpop.f32.mrf.mxu3 }
 0x7f2   :  { %v1168_v23 = vadd.f32 %v1156_v63, %v929_v48 }
 0x7f4   :  { %v1172_v26 = vadd.f32 %v1814_v25, %v1168_v23 }
 0x7f6   :  { %v2262_v28 = vadd.f32 %v1711_v24, %v1172_v26 }
 0x7f8   :  { %v1186_v54 = vsel %vm51_vm0, %v2262_v28, 0.0 }
 0x7f9   :  { %v1159_v37 = vpop.f32.mrf.mxu3  ;;  %1187 = vadd.xlane.f32.xlu1 %v1186_v54 }
 0x7fa   :  { %v1169_v39 = vadd.f32 %v1159_v37, %v930_v30  ;;  %v1712_v37 = vld [vmem:[%s2462_s7] ss:$0 sm:$0xff] }
 0x7fc   :  { %v1173_v31 = vadd.f32 %v1815_v50, %v1169_v39 }
 0x7fe   :  { %v2269_v32 = vadd.f32 %v1711_v24, %v1173_v31 }
 0x800   :  { %v1189_v19 = vsel %vm51_vm0, %v2269_v32, 0.0 }
 0x801   :  { %1190 = vadd.xlane.f32.xlu2 %v1189_v19 }
 0x806   :  { %v1162_v38 = vpop.f32.mrf.mxu3 }
 0x807   :  { %v1170_v43 = vadd.f32 %v1162_v38, %v931_v29 }
 0x809   :  { %v1174_v41 = vadd.f32 %v1816_v42, %v1170_v43 }
 0x80b   :  { %v2277_v44 = vadd.f32 %v1711_v24, %v1174_v41 }
 0x80d   :  { %v1192_v45 = vsel %vm51_vm0, %v2277_v44, 0.0 }
 0x80e   :  { %1193 = vadd.xlane.f32.xlu1 %v1192_v45 }
 0x826   :  { %v1165_v51 = vpop.f32.mrf.mxu3 }
 0x827   :  { %v1171_v56 = vadd.f32 %v1165_v51, %v932_v49 }
 0x829   :  { %v1175_v53 = vadd.f32 %v1817_v52, %v1171_v56 }
 0x82b   :  { %v2285_v57 = vadd.f32 %v1711_v24, %v1175_v53 }
 0x82d   :  { %v1195_v59 = vsel %vm51_vm0, %v2285_v57, 0.0 }
 0x82e   :  { %1196 = vadd.xlane.f32.xlu1 %v1195_v59 }
 0x86c   :  { %v1188_v60 = vpop.xlane.xlu1 %1187 }
 0x86d   :  { %v1198_v61 = vmul.f32 %v1188_v60, %v1947_v14 }
 0x86f   :  { %v1202_v0 = vsub.f32 %v2262_v28, %v1198_v61 }
 0x871   :  { %v1206_v58 = vmul.f32 %v1202_v0, %v1202_v0 }
 0x873   :  { %v1210_v1 = vsel %vm51_vm0, %v1206_v58, 0.0 }
 0x874   :  { %v1191_v2 = vpop.xlane.xlu2 %1190  ;;  %1211 = vadd.xlane.f32.xlu1 %v1210_v1 }
 0x875   :  { %v1199_v3 = vmul.f32 %v1191_v2, %v1947_v14 }
 0x877   :  { %v2294_v4 = vsub.f32 %v2269_v32, %v1199_v3 }
 0x879   :  { %v1207_v5 = vmul.f32 %v2294_v4, %v2294_v4 }
 0x87b   :  { %v1213_v6 = vsel %vm51_vm0, %v1207_v5, 0.0 }
 0x87c   :  { %1214 = vadd.xlane.f32.xlu1 %v1213_v6 }
 0x881   :  { %v1194_v7 = vpop.xlane.xlu1 %1193 }
 0x882   :  { %v1200_v8 = vmul.f32 %v1194_v7, %v1947_v14 }
 0x884   :  { %v2301_v9 = vsub.f32 %v2277_v44, %v1200_v8 }
 0x886   :  { %v1208_v10 = vmul.f32 %v2301_v9, %v2301_v9 }
 0x888   :  { %v1216_v11 = vsel %vm51_vm0, %v1208_v10, 0.0 }
 0x889   :  { %1217 = vadd.xlane.f32.xlu1 %v1216_v11 }
 0x8a1   :  { %v1197_v12 = vpop.xlane.xlu1 %1196 }
 0x8a2   :  { %v1201_v13 = vmul.f32 %v1197_v12, %v1947_v14 }
 0x8a4   :  { %v2308_v15 = vsub.f32 %v2285_v57, %v1201_v13 }
 0x8a6   :  { %v1209_v16 = vmul.f32 %v2308_v15, %v2308_v15 }
 0x8a8   :  { %v1219_v17 = vsel %vm51_vm0, %v1209_v16, 0.0 }
 0x8a9   :  { %1220 = vadd.xlane.f32.xlu2 %v1219_v17 }
 0x8e7   :  { %v1212_v33 = vpop.xlane.xlu1 %1211 }
 0x8e8   :  { %v1222_v62 = vmul.f32 %v1212_v33, %v1947_v14 }
 0x8ea   :  { %v1226_v40 = vadd.f32 1e-05, %v1222_v62  ;;  %v1508_v62 = vld [vmem:[%s2466_s11 + $0x58] sm:$0xff] }
 0x8ec   :  { %1790 = vrsqrt.f32 %v1226_v40  ;;  %vm1236_vm4 = vweird.f32 %v1226_v40 }
 0x8ef   :  { %v1215_v36 = vpop.xlane.xlu1 %1214 }
 0x8f0   :  { %v1223_v48 = vmul.f32 %v1215_v36, %v1947_v14  ;;  %v1507_v36 = vld [vmem:[%s2466_s11 + $0x50] sm:$0xff] }
 0x8f2   :  { %v1791_v63 = vpop.eup %1790  ;;  %v1227_v23 = vadd.f32 1e-05, %v1223_v48 }
 0x8f3   :  { %v1231_v24 = vmul.f32 %v1791_v63, %v1226_v40  ;;  %vm1237_vm3 = vweird.f32 %v1791_v63 }
 0x8f4   :  { %1792 = vrsqrt.f32 %v1227_v23  ;;  %vm1238_vm5 = vmor %vm1236_vm4, %vm1237_vm3  ;;  %vm1246_vm7 = vweird.f32 %v1227_v23 }
 0x8f5   :  { %v1232_v25 = vmul.f32 %v1791_v63, %v1231_v24  ;;  %v1505_v24 = vld [vmem:[%s2466_s11 + $0x40] sm:$0xff] }
 0x8f7   :  { %v1233_v26 = vmul.f32 0.5, %v1232_v25 }
 0x8f9   :  { %v1234_v27 = vsub.f32 1.5, %v1233_v26 }
 0x8fa   :  { %v1793_v20 = vpop.eup %1792 }
 0x8fb   :  { %v1235_v30 = vmul.f32 %v1791_v63, %v1234_v27  ;;  %v1241_v54 = vmul.f32 %v1793_v20, %v1227_v23  ;;  %vm1247_vm6 = vweird.f32 %v1793_v20 }
 0x8fc   :  { %v1218_v39 = vpop.xlane.xlu1 %1217  ;;  %vm1248_vm8 = vmor %vm1246_vm7, %vm1247_vm6 }
 0x8fd   :  { %v1239_v50 = vsel %vm1238_vm5, %v1791_v63, %v1235_v30  ;;  %v1242_v31 = vmul.f32 %v1793_v20, %v1241_v54  ;;  %v1224_v19 = vmul.f32 %v1218_v39, %v1947_v14  ;;  %v1506_v63 = vld [vmem:[%s2466_s11 + $0x48] sm:$0xff]  ;;  %v1503_v30 = vld [vmem:[%s2466_s11 + $0x30] sm:$0xff] }
 0x8fe   :  { %v1270_v55 = vmul.f32 %v1239_v50, %v1202_v0  ;;  %v1501_v50 = vld [vmem:[%s2466_s11 + $0x20] sm:$0xff] }
 0x8ff   :  { %v1243_v29 = vmul.f32 0.5, %v1242_v31  ;;  %v1228_v38 = vadd.f32 1e-05, %v1224_v19 }
 0x900   :  { %v1277_v43 = vmul.f32 %v1712_v37, %v1270_v55  ;;  %v1500_v55 = vld [vmem:[%s2466_s11 + $0x18] sm:$0xff] }
 0x901   :  { %v1244_v42 = vsub.f32 1.5, %v1243_v29  ;;  %1794 = vrsqrt.f32 %v1228_v38  ;;  %vm1256_vm10 = vweird.f32 %v1228_v38 }
 0x902   :  { %v1284_v41 = vadd.f32 %v1713_v34, %v1277_v43 }
 0x903   :  { %v1245_v45 = vmul.f32 %v1793_v20, %v1244_v42 }
 0x904   :  { %1643 = vmatmul.msk.f32.vlgmr.msrb.gmra.mxu0 %vm51_vm0, %v1284_v41 }
 0x905   :  { %v1249_v46 = vsel %vm1248_vm8, %v1793_v20, %v1245_v45  ;;  %v1504_v20 = vld [vmem:[%s2466_s11 + $0x38] sm:$0xff]  ;;  %v1498_v45 = vld [vmem:[%s2466_s11 + $0x8] sm:$0xff] }
 0x906   :  { %v1271_v47 = vmul.f32 %v1249_v46, %v2294_v4 }
 0x907   :  { %v1795_v49 = vpop.eup %1794 }
 0x908   :  { %v1251_v51 = vmul.f32 %v1795_v49, %v1228_v38  ;;  %v1278_v56 = vmul.f32 %v1712_v37, %v1271_v47  ;;  %vm1257_vm9 = vweird.f32 %v1795_v49  ;;  %v1499_v38 = vld [vmem:[%s2466_s11 + $0x10] sm:$0xff] }
 0x909   :  { %vm1258_vm11 = vmor %vm1256_vm10, %vm1257_vm9 }
 0x90a   :  { %v1252_v52 = vmul.f32 %v1795_v49, %v1251_v51  ;;  %v1285_v53 = vadd.f32 %v1713_v34, %v1278_v56  ;;  %v1497_v51 = vld [vmem:[%s2466_s11] sm:$0xff] }
 0x90c   :  { %v1253_v59 = vmul.f32 0.5, %v1252_v52  ;;  %1644 = vmatmul.msk.f32.gmra.mxu0 %vm51_vm0, %v1285_v53 }
 0x90e   :  { %v1254_v60 = vsub.f32 1.5, %v1253_v59 }
 0x910   :  { %v1255_v61 = vmul.f32 %v1795_v49, %v1254_v60 }
 0x912   :  { %v1259_v0 = vsel %vm1258_vm11, %v1795_v49, %v1255_v61 }
 0x913   :  { %v1272_v58 = vmul.f32 %v1259_v0, %v2301_v9 }
 0x915   :  { %v1279_v1 = vmul.f32 %v1712_v37, %v1272_v58 }
 0x917   :  { %v1286_v2 = vadd.f32 %v1713_v34, %v1279_v1 }
 0x919   :  { %1645 = vmatmul.msk.f32.gmra.mxu0 %vm51_vm0, %v1286_v2 }
 0x91c   :  { %v1221_v3 = vpop.xlane.xlu2 %1220 }
 0x91d   :  { %v1225_v4 = vmul.f32 %v1221_v3, %v1947_v14  ;;  %v1512_v14 = vld [vmem:[%s2466_s11 + $0x78] sm:$0xff] }
 0x91e   :  { %1517 = vmatpush.msra.mxu1 %v1512_v14 }
 0x91f   :  { %v1229_v5 = vadd.f32 1e-05, %v1225_v4 }
 0x920   :  { %1518 = vmatpush.msra.mxu1 %v1511_v18 }
 0x921   :  { %1796 = vrsqrt.f32 %v1229_v5  ;;  %vm1266_vm13 = vweird.f32 %v1229_v5 }
 0x927   :  { %v1797_v6 = vpop.eup %1796 }
 0x928   :  { %v1261_v7 = vmul.f32 %v1797_v6, %v1229_v5  ;;  %vm1267_vm12 = vweird.f32 %v1797_v6 }
 0x929   :  { %vm1268_vm14 = vmor %vm1266_vm13, %vm1267_vm12 }
 0x92a   :  { %v1262_v8 = vmul.f32 %v1797_v6, %v1261_v7 }
 0x92c   :  { %v1263_v10 = vmul.f32 0.5, %v1262_v8 }
 0x92e   :  { %v1264_v11 = vsub.f32 1.5, %v1263_v10 }
 0x930   :  { %v1265_v12 = vmul.f32 %v1797_v6, %v1264_v11 }
 0x932   :  { %v1269_v13 = vsel %vm1268_vm14, %v1797_v6, %v1265_v12 }
 0x933   :  { %v1273_v9 = vmul.f32 %v1269_v13, %v2308_v15  ;;  %v1510_v15 = vld [vmem:[%s2466_s11 + $0x68] sm:$0xff] }
 0x934   :  { %1519 = vmatpush.msra.mxu1 %v1510_v15 }
 0x935   :  { %v1280_v16 = vmul.f32 %v1712_v37, %v1273_v9  ;;  %v1502_v37 = vld [vmem:[%s2466_s11 + $0x28] sm:$0xff] }
 0x936   :  { %1520 = vmatpush.msra.mxu1 %v1509_v22 }
 0x937   :  { %v1287_v17 = vadd.f32 %v1713_v34, %v1280_v16 }
 0x938   :  { %1521 = vmatpush.msra.mxu1 %v1508_v62 }
 0x939   :  { %1646 = vmatmul.msk.f32.gmra.mxu0 %vm51_vm0, %v1287_v17 }
 0x93a   :  { %1522 = vmatpush.msra.mxu1 %v1507_v36 }
 0x93c   :  { %1523 = vmatpush.msra.mxu1 %v1506_v63 }
 0x93e   :  { %1524 = vmatpush.msra.mxu1 %v1505_v24 }
 0x940   :  { %1525 = vmatpush.msra.mxu1 %v1504_v20 }
 0x942   :  { %1526 = vmatpush.msra.mxu1 %v1503_v30 }
 0x944   :  { %1527 = vmatpush.msra.mxu1 %v1502_v37 }
 0x946   :  { %1528 = vmatpush.msra.mxu1 %v1501_v50 }
 0x948   :  { %1529 = vmatpush.msra.mxu1 %v1500_v55 }
 0x94a   :  { %1530 = vmatpush.msra.mxu1 %v1499_v38 }
 0x94c   :  { %1531 = vmatpush.msra.mxu1 %v1498_v45 }
 0x94e   :  { %1532 = vmatpush.msra.mxu1 %v1497_v51  ;;  %v1857_v51 = vmov -1.0  }
 0x981   :  { %v1325_v35 = vpop.f32.mrf.mxu0 }
 0x982   :  { %v2360_v33 = vadd.f32 %v2351_v21, %v1325_v35 }
 0x984   :  { %v2366_v40 = vmul.f32 0.70710677, %v2360_v33 }
 0x986   :  { %v1353_v48 = vand.u32 2147483647, %v2366_v40  ;;  %vm1345_vm10 = vcmp.ge.f32.partialorder %v2366_v40, 0.0  ;;  %v1337_v40 = vmul.f32 0.5, %v2360_v33 }
 0x988   :  { %v1357_v23 = vmul.f32 0.3275911, %v1353_v48  ;;  %v1461_v58 = vsub.f32 0.0, %v1353_v48 }
 0x989   :  { %v1328_v25 = vpop.f32.mrf.mxu0 }
 0x98a   :  { %v1361_v26 = vadd.f32 1.0, %v1357_v23  ;;  %v2379_v27 = vadd.f32 %v2351_v21, %v1328_v25  ;;  %v1465_v8 = vmul.f32 %v1461_v58, %v1353_v48 }
 0x98c   :  { %1798 = vrcp.f32 %v1361_v26  ;;  %v2388_v54 = vmul.f32 0.70710677, %v2379_v27  ;;  %v1376_v42 = vand.u32 2147483648, %v1361_v26  ;;  %v1374_v47 = vand.u32 2147483647, %v1361_v26 }
 0x98d   :  { %vm1370_vm1 = vweird.f32 %v1361_v26  ;;  %v1469_v17 = vmul.f32 1.442695, %v1465_v8 }
 0x98e   :  { %v2394_v39 = vand.u32 2147483647, %v2388_v54  ;;  %v1377_v53 = vor.u32 1.1754944e-38, %v1376_v42  ;;  %vm1375_vm3 = vcmp.eq.f32.partialorder %v1374_v47, 8.507059e+37  ;;  %vm1346_vm13 = vcmp.ge.f32.partialorder %v2388_v54, 0.0 }
 0x990   :  { %v1358_v31 = vmul.f32 0.3275911, %v2394_v39  ;;  %v1462_v15 = vsub.f32 0.0, %v2394_v39 }
 0x992   :  { %v1799_v19 = vpop.eup %1798  ;;  %v1362_v29 = vadd.f32 1.0, %v1358_v31  ;;  %v1466_v24 = vmul.f32 %v1462_v15, %v2394_v39 }
 0x993   :  { %v1366_v34 = vmul.f32 %v1799_v19, %v1361_v26  ;;  %vm1371_vm15 = vweird.f32 %v1799_v19 }
 0x994   :  { %1800 = vrcp.f32 %v1362_v29  ;;  %vm1372_vm2 = vmor %vm1370_vm1, %vm1371_vm15  ;;  %v1391_v7 = vand.u32 2147483648, %v1362_v29  ;;  %v1389_v11 = vand.u32 2147483647, %v1362_v29  ;;  %vm1385_vm5 = vweird.f32 %v1362_v29 }
 0x995   :  { %v1367_v43 = vsub.f32 1.0, %v1366_v34  ;;  %v1471_v55 = vmul.f32 1.442695, %v1466_v24 }
 0x996   :  { %v1331_v41 = vpop.f32.mrf.mxu0  ;;  %v1392_v16 = vor.u32 1.1754944e-38, %v1391_v7  ;;  %vm1390_vm7 = vcmp.eq.f32.partialorder %v1389_v11, 8.507059e+37 }
 0x997   :  { %v1368_v46 = vmul.f32 %v1799_v19, %v1367_v43  ;;  %v2410_v49 = vadd.f32 %v2351_v21, %v1331_v41 }
 0x999   :  { %v1369_v56 = vadd.f32 %v1799_v19, %v1368_v46  ;;  %v2416_v52 = vmul.f32 0.70710677, %v2410_v49 }
 0x99a   :  { %v1801_v59 = vpop.eup %1800 }
 0x99b   :  { %v1373_v60 = vsel %vm1372_vm2, %v1799_v19, %v1369_v56  ;;  %v2419_v61 = vand.u32 2147483647, %v2416_v52  ;;  %v1381_v1 = vmul.f32 %v1801_v59, %v1362_v29  ;;  %vm1386_vm4 = vweird.f32 %v1801_v59 }
 0x99c   :  { %v1378_v0 = vsel %vm1375_vm3, %v1377_v53, %v1373_v60  ;;  %vm1387_vm6 = vmor %vm1385_vm5, %vm1386_vm4  ;;  %v1349_v56 = vsel %vm1345_vm10, 1.0, %v1857_v51  ;;  %vm1347_vm14 = vcmp.ge.f32.partialorder %v2416_v52, 0.0 }
 0x99d   :  { %v1425_v2 = vmul.f32 1.0614054, %v1378_v0  ;;  %v1359_v3 = vmul.f32 0.3275911, %v2419_v61  ;;  %v1382_v4 = vsub.f32 1.0, %v1381_v1  ;;  %v1463_v46 = vsub.f32 0.0, %v2419_v61 }
 0x99f   :  { %v1429_v5 = vadd.f32 -1.4531521, %v1425_v2  ;;  %v1363_v6 = vadd.f32 1.0, %v1359_v3  ;;  %v1383_v10 = vmul.f32 %v1801_v59, %v1382_v4  ;;  %v1467_v2 = vmul.f32 %v1463_v46, %v2419_v61 }
 0x9a0   :  { %v1350_v61 = vsel %vm1346_vm13, 1.0, %v1857_v51 }
 0x9a1   :  { %v1433_v12 = vmul.f32 %v1429_v5, %v1378_v0  ;;  %1802 = vrcp.f32 %v1363_v6  ;;  %v1384_v13 = vadd.f32 %v1801_v59, %v1383_v10  ;;  %v1406_v30 = vand.u32 2147483648, %v1363_v6 }
 0x9a2   :  { %1804 = vpow2.f32 %v1469_v17  ;;  %v1404_v31 = vand.u32 2147483647, %v1363_v6  ;;  %vm1400_vm9 = vweird.f32 %v1363_v6 }
 0x9a3   :  { %v1437_v9 = vadd.f32 1.4214138, %v1433_v12  ;;  %v1388_v14 = vsel %vm1387_vm6, %v1801_v59, %v1384_v13  ;;  %v1407_v42 = vor.u32 1.1754944e-38, %v1406_v30  ;;  %1806 = vpow2.f32 %v1471_v55 }
 0x9a4   :  { %v1393_v22 = vsel %vm1390_vm7, %v1392_v16, %v1388_v14  ;;  %vm1405_vm12 = vcmp.eq.f32.partialorder %v1404_v31, 8.507059e+37  ;;  %v1473_v12 = vmul.f32 1.442695, %v1467_v2 }
 0x9a5   :  { %v1441_v18 = vmul.f32 %v1437_v9, %v1378_v0  ;;  %v1426_v35 = vmul.f32 1.0614054, %v1393_v22 }
 0x9a6   :  { %1808 = vpow2.f32 %v1473_v12 }
 0x9a7   :  { %v1803_v62 = vpop.eup %1802  ;;  %v1445_v36 = vadd.f32 -0.28449672, %v1441_v18  ;;  %v1430_v63 = vadd.f32 -1.4531521, %v1426_v35 }
 0x9a8   :  { %v1396_v48 = vmul.f32 %v1803_v62, %v1363_v6  ;;  %vm1401_vm8 = vweird.f32 %v1803_v62  ;;  %v1805_v34 = vpop.eup %1804 }
 0x9a9   :  { %v1449_v23 = vmul.f32 %v1445_v36, %v1378_v0  ;;  %v1434_v26 = vmul.f32 %v1430_v63, %v1393_v22  ;;  %vm1402_vm11 = vmor %vm1400_vm9, %vm1401_vm8  ;;  %v1807_v6 = vpop.eup %1806 }
 0x9aa   :  { %v1397_v25 = vsub.f32 1.0, %v1396_v48 }
 0x9ab   :  { %v1453_v20 = vadd.f32 0.2548296, %v1449_v23  ;;  %v1438_v37 = vadd.f32 1.4214138, %v1434_v26 }
 0x9ac   :  { %v1398_v50 = vmul.f32 %v1803_v62, %v1397_v25  ;;  %v1809_v48 = vpop.eup %1808  ;;  %v1351_v25 = vsel %vm1347_vm14, 1.0, %v1857_v51 }
 0x9ad   :  { %v1457_v19 = vmul.f32 %v1453_v20, %v1378_v0  ;;  %v1442_v29 = vmul.f32 %v1438_v37, %v1393_v22 }
 0x9ae   :  { %v1399_v38 = vadd.f32 %v1803_v62, %v1398_v50 }
 0x9af   :  { %v1477_v43 = vmul.f32 %v1805_v34, %v1457_v19  ;;  %v1446_v39 = vadd.f32 -0.28449672, %v1442_v29 }
 0x9b0   :  { %v1403_v41 = vsel %vm1402_vm11, %v1803_v62, %v1399_v38 }
 0x9b1   :  { %v1481_v45 = vsub.f32 1.0, %v1477_v43  ;;  %v1408_v47 = vsel %vm1405_vm12, %v1407_v42, %v1403_v41  ;;  %v1450_v53 = vmul.f32 %v1446_v39, %v1393_v22 }
 0x9b2   :  { %v1427_v59 = vmul.f32 1.0614054, %v1408_v47 }
 0x9b3   :  { %v1485_v60 = vmul.f32 %v1481_v45, %v1349_v56  ;;  %v1454_v0 = vadd.f32 0.2548296, %v1450_v53 }
 0x9b4   :  { %v1431_v58 = vadd.f32 -1.4531521, %v1427_v59 }
 0x9b5   :  { %v1489_v1 = vadd.f32 1.0, %v1485_v60  ;;  %v1458_v4 = vmul.f32 %v1454_v0, %v1393_v22 }
 0x9b6   :  { %v1334_v3 = vpop.f32.mrf.mxu0  ;;  %v1435_v5 = vmul.f32 %v1431_v58, %v1408_v47 }
 0x9b7   :  { %v1493_v7 = vmul.f32 %v1489_v1, %v1337_v40  ;;  %v2430_v8 = vadd.f32 %v2351_v21, %v1334_v3  ;;  %v1478_v10 = vmul.f32 %v1807_v6, %v1458_v4  ;;  %v1338_v21 = vmul.f32 0.5, %v2379_v27  ;;  %v1715_v6 = vld [vmem:[%s2467_s12] ss:$0 sm:$0xff]  ;;  %s1558_s12 = sshll.u32 %s1858_s2, 4  ;;  %s1559_s12 = int_to_ptr.vmem [resolvable:$true] %s1558_s12 }
 0x9b8   :  { %v1439_v11 = vadd.f32 1.4214138, %v1435_v5  ;;  %v1339_v27 = vmul.f32 0.5, %v2410_v49 }
 0x9b9   :  { %v1344_v13 = vmul.f32 0.70710677, %v2430_v8  ;;  %1533 = vmatmul.f32.vlgmr.msra.gmra.mxu1 %v1493_v7  ;;  %v1482_v33 = vsub.f32 1.0, %v1478_v10  ;;  %v1340_v3 = vmul.f32 0.5, %v2430_v8 }
 0x9ba   :  { %v1443_v9 = vmul.f32 %v1439_v11, %v1408_v47 }
 0x9bb   :  { %v1356_v16 = vand.u32 2147483647, %v1344_v13  ;;  %v1486_v17 = vmul.f32 %v1482_v33, %v1350_v61  ;;  %vm1348_vm4 = vcmp.ge.f32.partialorder %v1344_v13, 0.0 }
 0x9bc   :  { %v1447_v14 = vadd.f32 -0.28449672, %v1443_v9  ;;  %v1352_v1 = vsel %vm1348_vm4, 1.0, %v1857_v51 }
 0x9bd   :  { %v1360_v18 = vmul.f32 0.3275911, %v1356_v16  ;;  %v1490_v15 = vadd.f32 1.0, %v1486_v17  ;;  %v1464_v38 = vsub.f32 0.0, %v1356_v16 }
 0x9be   :  { %v1451_v22 = vmul.f32 %v1447_v14, %v1408_v47 }
 0x9bf   :  { %v1364_v54 = vadd.f32 1.0, %v1360_v18  ;;  %v1494_v35 = vmul.f32 %v1490_v15, %v1338_v21  ;;  %v1468_v41 = vmul.f32 %v1464_v38, %v1356_v16 }
 0x9c0   :  { %v1455_v62 = vadd.f32 0.2548296, %v1451_v22 }
 0x9c1   :  { %1810 = vrcp.f32 %v1364_v54  ;;  %1536 = vmatmul.f32.gmra.mxu1 %v1494_v35  ;;  %v1421_v50 = vand.u32 2147483648, %v1364_v54  ;;  %v1419_v55 = vand.u32 2147483647, %v1364_v54  ;;  %vm1415_vm1 = vweird.f32 %v1364_v54 }
 0x9c2   :  { %v1459_v36 = vmul.f32 %v1455_v62, %v1408_v47  ;;  %v1475_v46 = vmul.f32 1.442695, %v1468_v41 }
 0x9c3   :  { %v1422_v52 = vor.u32 1.1754944e-38, %v1421_v50  ;;  %vm1420_vm3 = vcmp.eq.f32.partialorder %v1419_v55, 8.507059e+37 }
 0x9c4   :  { %v1479_v63 = vmul.f32 %v1809_v48, %v1459_v36  ;;  %1812 = vpow2.f32 %v1475_v46 }
 0x9c6   :  { %v1483_v23 = vsub.f32 1.0, %v1479_v63 }
 0x9c7   :  { %v1811_v24 = vpop.eup %1810 }
 0x9c8   :  { %v1411_v26 = vmul.f32 %v1811_v24, %v1364_v54  ;;  %v1487_v20 = vmul.f32 %v1483_v23, %v1351_v25  ;;  %vm1416_vm15 = vweird.f32 %v1811_v24 }
 0x9c9   :  { %vm1417_vm2 = vmor %vm1415_vm1, %vm1416_vm15 }
 0x9ca   :  { %v1412_v30 = vsub.f32 1.0, %v1411_v26  ;;  %v1491_v37 = vadd.f32 1.0, %v1487_v20  ;;  %v1813_v0 = vpop.eup %1812 }
 0x9cc   :  { %v1495_v31 = vmul.f32 %v1491_v37, %v1339_v27  ;;  %v1413_v19 = vmul.f32 %v1811_v24, %v1412_v30 }
 0x9ce   :  { %1539 = vmatmul.f32.gmra.mxu1 %v1495_v31  ;;  %v1414_v34 = vadd.f32 %v1811_v24, %v1413_v19 }
 0x9d0   :  { %v1418_v29 = vsel %vm1417_vm2, %v1811_v24, %v1414_v34 }
 0x9d1   :  { %v1423_v43 = vsel %vm1420_vm3, %v1422_v52, %v1418_v29 }
 0x9d2   :  { %v1428_v42 = vmul.f32 1.0614054, %v1423_v43 }
 0x9d4   :  { %v1432_v39 = vadd.f32 -1.4531521, %v1428_v42 }
 0x9d6   :  { %v1436_v49 = vmul.f32 %v1432_v39, %v1423_v43 }
 0x9d8   :  { %v1440_v45 = vadd.f32 1.4214138, %v1436_v49 }
 0x9da   :  { %v1444_v47 = vmul.f32 %v1440_v45, %v1423_v43 }
 0x9dc   :  { %v1448_v56 = vadd.f32 -0.28449672, %v1444_v47 }
 0x9de   :  { %v1452_v53 = vmul.f32 %v1448_v56, %v1423_v43 }
 0x9e0   :  { %v1456_v59 = vadd.f32 0.2548296, %v1452_v53 }
 0x9e2   :  { %v1460_v60 = vmul.f32 %v1456_v59, %v1423_v43 }
 0x9e4   :  { %v1480_v58 = vmul.f32 %v1813_v0, %v1460_v60 }
 0x9e6   :  { %v1484_v40 = vsub.f32 1.0, %v1480_v58 }
 0x9e8   :  { %v1488_v2 = vmul.f32 %v1484_v40, %v1352_v1 }
 0x9ea   :  { %v1492_v4 = vadd.f32 1.0, %v1488_v2 }
 0x9ec   :  { %v1496_v5 = vmul.f32 %v1492_v4, %v1340_v3 }
 0x9ee   :  { %1542 = vmatmul.f32.gmra.mxu1 %v1496_v5 }
 0xa36   :  { %v1534_v7 = vpop.f32.mrf.mxu1 }
 0xa37   :  { %v1535_v10 = vadd.f32 %v1715_v6, %v1534_v7 }
 0xa39   :  { %v1546_v11 = vadd.f32 %v1535_v10, %v2262_v28 }
 0xa3b   :  { %1550 = vst.msk [vmem:[#allocation2] sm:$0xff] %vm51_vm0, %v1546_v11 }
 0xa3e   :  { %v1537_v12 = vpop.f32.mrf.mxu1 }
 0xa3f   :  { %v1538_v13 = vadd.f32 %v1715_v6, %v1537_v12 }
 0xa41   :  { %v1547_v51 = vadd.f32 %v1538_v13, %v2269_v32 }
 0xa43   :  { %1551 = vst.msk [vmem:[#allocation2 + $0x8] sm:$0xff] %vm51_vm0, %v1547_v51 }
 0xa4b   :  { %v1540_v8 = vpop.f32.mrf.mxu1 }
 0xa4c   :  { %v1541_v33 = vadd.f32 %v1715_v6, %v1540_v8 }
 0xa4e   :  { %v1548_v9 = vadd.f32 %v1541_v33, %v2277_v44 }
 0xa50   :  { %1552 = vst.msk [vmem:[#allocation2 + $0x10] sm:$0xff] %vm51_vm0, %v1548_v9 }
 0xa6b   :  { %v1543_v28 = vpop.f32.mrf.mxu1 }
 0xa6c   :  { %v1544_v16 = vadd.f32 %v1715_v6, %v1543_v28 }
 0xa6e   :  { %v1549_v32 = vadd.f32 %v1544_v16, %v2285_v57 }
 0xa70   :  { %1553 = vst.msk [vmem:[#allocation2 + $0x18] sm:$0xff] %vm51_vm0, %v1549_v32 }
 0xa71   :  { %1566 = dma.vmem_to_hbm [thread:$0]  %s1559_s12, 512, %s1561_s4, [#allocation3], %s1859_s6, %s1859_s6, %s1860_s10  }
 0xa72   :  { %1842 = dma.done.wait [#allocation3], 512  }
 0xa73   :  { %1843 = vsyncadd [#allocation3], 4294966784 }
 0xa74   :  { %1571 = vsyncpa [#allocation3], 1 }

</bundles_post_ra>
